<compile_context>
chip_gen: v7x
topology: tpu7x:2x2x1
jax: 0.10.0
libtpu: 0.0.40
codegen_flags: <defaults>
</compile_context>

<pallas_src>
import math
import functools

import jax
import jax.numpy as jnp
from jax import lax
from jax.experimental import pallas as pl
from jax.experimental.pallas import tpu as pltpu

_NEG_INF = -1e30


def _rotate_half(x):
    """concat(x[:, d/2:], x[:, :d/2]) — rotate-half RoPE in the permuted layout."""
    d = x.shape[-1]
    h = d // 2
    if d % 128 == 0:
        return pltpu.roll(x, h, 1)  # XLU lane rotation (separate slot from VPU)
    return jnp.concatenate([x[:, h:], x[:, :h]], axis=-1)


def _flash_group_kernel(x_ref, wq_ref, wkv_ref, wo_ref, cos_ref, sin_ref,
                        o_ref,
                        q_scr, m_scr, l_scr, acc_scr,
                        *, n_group_heads, head_dim, kv_tile):
    """Grid step (b, head_group, kv_tile): flash update for G heads at once."""
    G, hd, tk = n_group_heads, head_dim, kv_tile
    hg = pl.program_id(1)
    kv = pl.program_id(2)
    n_kv = pl.num_programs(2)
    S = q_scr.shape[0]

    @pl.when(jnp.logical_and(hg == 0, kv == 0))
    def _init_out():
        o_ref[...] = jnp.zeros_like(o_ref)

    # -------- per-(b, head_group) prologue: fused Q projection + RoPE -------
    @pl.when(kv == 0)
    def _project_q():
        x = x_ref[0]                                                    # (S, D) bf16
        q_all = jnp.dot(x, wq_ref[0],
                        preferred_element_type=jnp.float32)             # (S, G*hd)
        cos = cos_ref[...]                                              # (S, hd) f32
        sin = sin_ref[...]                                              # signed sin
        parts = []
        for g in range(G):
            q_h = q_all[:, g * hd:(g + 1) * hd]
            parts.append(q_h * cos + _rotate_half(q_h) * sin)
        q_scr[...] = jnp.concatenate(parts, axis=-1).astype(jnp.bfloat16)
        m_scr[...] = jnp.full_like(m_scr, _NEG_INF)
        l_scr[...] = jnp.zeros_like(l_scr)
        acc_scr[...] = jnp.zeros_like(acc_scr)

    # -------- per KV tile: fused K|V projection, RoPE(K), flash update ------
    kv_start = pl.multiple_of(kv * tk, tk)
    x_kv = x_ref[0, pl.ds(kv_start, tk), :]                             # (tk, D) bf16
    kv_all = jnp.dot(x_kv, wkv_ref[0],
                     preferred_element_type=jnp.float32)                # (tk, 2*G*hd)
    cos_kv = cos_ref[pl.ds(kv_start, tk), :]                            # (tk, hd)
    sin_kv = sin_ref[pl.ds(kv_start, tk), :]

    row = lax.broadcasted_iota(jnp.int32, (S, tk), 0)
    col = kv_start + lax.broadcasted_iota(jnp.int32, (S, tk), 1)
    causal = col <= row                                                 # start_pos = 0

    for g in range(G):
        k_h = kv_all[:, g * hd:(g + 1) * hd]                            # (tk, hd) f32
        v_h = kv_all[:, (G + g) * hd:(G + g + 1) * hd].astype(jnp.bfloat16)
        k_h = (k_h * cos_kv + _rotate_half(k_h) * sin_kv).astype(jnp.bfloat16)
        q_h = q_scr[:, g * hd:(g + 1) * hd]                             # (S, hd) bf16

        # Scores with no explicit K transpose (MXU transposed-operand mode).
        s = lax.dot_general(q_h, k_h, (((1,), (1,)), ((), ())),
                            preferred_element_type=jnp.float32)         # (S, tk)
        s = jnp.where(causal, s, _NEG_INF)

        m_prev = m_scr[:, g:g + 1]
        m_new = jnp.maximum(m_prev, jnp.max(s, axis=-1, keepdims=True))
        alpha = jnp.exp(m_prev - m_new)
        p = jnp.exp(s - m_new)
        l_scr[:, g:g + 1] = alpha * l_scr[:, g:g + 1] + jnp.sum(
            p, axis=-1, keepdims=True)
        acc_scr[:, g * hd:(g + 1) * hd] = (
            alpha * acc_scr[:, g * hd:(g + 1) * hd]
            + jnp.dot(p.astype(jnp.bfloat16), v_h,
                      preferred_element_type=jnp.float32))
        m_scr[:, g:g + 1] = m_new

    # -------- per-(b, head_group) epilogue: normalize + W_o partial ---------
    @pl.when(kv == n_kv - 1)
    def _finalize():
        parts = []
        for g in range(G):
            inv_l = pl.reciprocal(l_scr[:, g:g + 1], approx=True)       # EUP slot
            parts.append(acc_scr[:, g * hd:(g + 1) * hd] * inv_l)
        ctx = jnp.concatenate(parts, axis=-1).astype(jnp.bfloat16)       # (S, G*hd)
        o_ref[0] += jnp.dot(ctx, wo_ref[0],
                            preferred_element_type=jnp.float32)


def _vmem_limit_bytes():
    try:
        cap = pltpu.get_tpu_info().vmem_capacity_bytes
        return int(cap) * 3 // 4
    except Exception:
        return 48 * 1024 * 1024   # conservative (fits v5e/v6e/v7x)


def _pick_head_group(n_heads, head_dim, dim, seq_len, vmem_budget):
    """Largest divisor of n_heads with G*hd <= ~256 that fits the VMEM budget."""
    target = max(1, 256 // max(head_dim, 1))
    best = 1
    for g in range(1, n_heads + 1):
        if n_heads % g or g > target:
            continue
        w_bytes = 2 * (4 * dim * g * head_dim * 2)          # wq+wkv+wo bf16, 2 buffers
        s_bytes = seq_len * g * (head_dim * 6 + 8)          # q bf16 + acc f32 + m/l
        a_bytes = 2 * seq_len * dim * (2 + 4)               # x bf16 + out f32 blocks
        if w_bytes + s_bytes + a_bytes <= vmem_budget // 2:
            best = g
    return best


def _pick_kv_tile(seq_len):
    for t in (512, 256, 128, 64, 32, 16, 8):
        if seq_len >= t and seq_len % t == 0:
            return t
    return seq_len


def attention_forward(x, wq, wk, wv, wo, *, n_heads, rope_theta=10000.0):
    """x: (B, S, D) f32; wq/wk/wv/wo: PyTorch Linear weights of shape (out, in)."""
    B, S, D = x.shape
    hd = D // n_heads
    scale = 1.0 / math.sqrt(hd)

    vmem_budget = _vmem_limit_bytes()
    G = _pick_head_group(n_heads, hd, D, S, vmem_budget)
    n_groups = n_heads // G
    tk = _pick_kv_tile(S)
    n_kv = S // tk

    # Even-then-odd column permutation for rotate-half RoPE.  q·k over head_dim
    # is invariant to a permutation applied to BOTH Q and K columns.
    perm = jnp.concatenate([jnp.arange(0, hd, 2), jnp.arange(1, hd, 2)])

    def per_head(w):                      # (out, in) -> (D, H, hd)
        return w.T.reshape(D, n_heads, hd)

    wq_h = per_head(wq)[:, :, perm] * scale      # score scale folded into W_q
    wk_h = per_head(wk)[:, :, perm]
    wv_h = per_head(wv)

    def group(wh):                        # (D, H, hd) -> (n_groups, D, G*hd)
        return wh.reshape(D, n_groups, G * hd).transpose(1, 0, 2)

    wq_grp = group(wq_h).astype(jnp.bfloat16)
    wkv_grp = jnp.concatenate([group(wk_h), group(wv_h)],
                              axis=-1).astype(jnp.bfloat16)              # (ng, D, 2*G*hd)
    wo_grp = wo.T.reshape(n_groups, G * hd, D).astype(jnp.bfloat16)

    # RoPE tables (start_pos = 0) in the permuted layout; sign baked into sin.
    inv_freq = 1.0 / (rope_theta ** (jnp.arange(0, hd, 2, dtype=jnp.float32) / hd))
    ang = jnp.outer(jnp.arange(S, dtype=jnp.float32), inv_freq)           # (S, hd/2)
    cos_t = jnp.concatenate([jnp.cos(ang), jnp.cos(ang)], axis=-1)        # (S, hd)
    sin_t = jnp.concatenate([-jnp.sin(ang), jnp.sin(ang)], axis=-1)       # signed

    x_bf = x.astype(jnp.bfloat16)

    kernel = functools.partial(_flash_group_kernel,
                               n_group_heads=G, head_dim=hd, kv_tile=tk)

    flops = 2 * B * S * D * D * 4 + 2 * B * n_heads * S * S * hd * 2
    bytes_accessed = (B * S * D * 2 + B * S * D * 4 + 4 * D * D * 2
                      + 2 * S * hd * 4)
    cost = pl.CostEstimate(flops=flops,
                           transcendentals=B * n_heads * S * S,
                           bytes_accessed=bytes_accessed)

    grid_spec = pltpu.PrefetchScalarGridSpec(
        num_scalar_prefetch=0,
        grid=(B, n_groups, n_kv),
        in_specs=[
            pl.BlockSpec((1, S, D), lambda b, h, k: (b, 0, 0)),            # x
            pl.BlockSpec((1, D, G * hd), lambda b, h, k: (h, 0, 0)),       # W_q (scaled, permuted)
            pl.BlockSpec((1, D, 2 * G * hd), lambda b, h, k: (h, 0, 0)),   # fused W_k|W_v
            pl.BlockSpec((1, G * hd, D), lambda b, h, k: (h, 0, 0)),       # W_o
            pl.BlockSpec((S, hd), lambda b, h, k: (0, 0)),                 # cos
            pl.BlockSpec((S, hd), lambda b, h, k: (0, 0)),                 # signed sin
        ],
        out_specs=pl.BlockSpec((1, S, D), lambda b, h, k: (b, 0, 0)),
        scratch_shapes=[
            pltpu.VMEM((S, G * hd), jnp.bfloat16),    # rotated Q (per head group)
            pltpu.VMEM((S, G), jnp.float32),          # m: running row max
            pltpu.VMEM((S, G), jnp.float32),          # l: running denominator
            pltpu.VMEM((S, G * hd), jnp.float32),     # acc: unnormalized context
        ],
    )

    return pl.pallas_call(
        kernel,
        out_shape=jax.ShapeDtypeStruct((B, S, D), jnp.float32),
        grid_spec=grid_spec,
        compiler_params=pltpu.CompilerParams(
            dimension_semantics=("parallel", "arbitrary", "arbitrary"),
            vmem_limit_bytes=vmem_budget),
        cost_estimate=cost,
    )(x_bf, wq_grp, wkv_grp, wo_grp, cos_t, sin_t)


def _reference_forward(x, wq, wk, wv, wo, *, n_heads):
    """Pure-JAX f32 reference matching the PyTorch module (use_cache=False)."""
    B, S, D = x.shape
    hd = D // n_heads
    xq = (x @ wq.T).reshape(B, S, n_heads, hd)
    xk = (x @ wk.T).reshape(B, S, n_heads, hd)
    xv = (x @ wv.T).reshape(B, S, n_heads, hd)

    inv_freq = 1.0 / (10000.0 ** (jnp.arange(0, hd, 2, dtype=jnp.float32) / hd))
    ang = jnp.outer(jnp.arange(S, dtype=jnp.float32), inv_freq)          # (S, hd/2)
    cos = jnp.cos(ang)[None, :, None, :]
    sin = jnp.sin(ang)[None, :, None, :]

    def rope(t):
        tc = t.reshape(B, S, n_heads, hd // 2, 2)
        re, im = tc[..., 0], tc[..., 1]
        out_re = re * cos - im * sin
        out_im = re * sin + im * cos
        return jnp.stack([out_re, out_im], axis=-1).reshape(B, S, n_heads, hd)

    xq, xk = rope(xq), rope(xk)
    xq = xq.transpose(0, 2, 1, 3)
    xk = xk.transpose(0, 2, 1, 3)
    xv = xv.transpose(0, 2, 1, 3)
    row = jnp.arange(S)[:, None]
    col = jnp.arange(S)[None, :]
    mask = jnp.where(col > row, -1e30, 0.0).astype(jnp.float32)
    scores = jnp.einsum('bhqd,bhkd->bhqk', xq, xk) / math.sqrt(hd) + mask[None, None]
    scores = jax.nn.softmax(scores, axis=-1)
    out = jnp.einsum('bhqk,bhkd->bhqd', scores, xv)
    out = out.transpose(0, 2, 1, 3).reshape(B, S, D)
    return out @ wo.T


if __name__ == "__main__":
    # Small config consistent with ModelArgs: dim=32, n_heads=4, seq=8, batch=2.
    B, S, D, H = 2, 8, 32, 4

    key = jax.random.PRNGKey(0)
    kx, kq, kk, kvk, ko = jax.random.split(key, 5)
    x = jax.random.normal(kx, (B, S, D), dtype=jnp.float32)
    # PyTorch Linear convention: (out_features, in_features).
    wq = jax.random.normal(kq, (D, D), dtype=jnp.float32) * 0.05
    wk = jax.random.normal(kk, (D, D), dtype=jnp.float32) * 0.05
    wv = jax.random.normal(kvk, (D, D), dtype=jnp.float32) * 0.05
    wo = jax.random.normal(ko, (D, D), dtype=jnp.float32) * 0.05

    out = jax.block_until_ready(attention_forward(x, wq, wk, wv, wo, n_heads=H))
    ref = _reference_forward(x, wq, wk, wv, wo, n_heads=H)

    assert out.shape == (B, S, D)
    # bf16 MXU operands with f32 accumulation -> compare against the f32
    # reference at bf16-appropriate tolerance.
    assert jnp.allclose(out, ref, atol=3e-2, rtol=3e-2), "mismatch vs reference"

    print("KERNEL_OK")
</pallas_src>

<mosaic_0001>
module attributes {stable_mosaic.version = 11 : i64} {
  func.func @_flash_group_kernel(%arg0: i32, %arg1: i32, %arg2: i32, %arg3: memref<1x8x32xbf16, #tpu.memory_space<vmem>>, %arg4: memref<1x32x32xbf16, #tpu.memory_space<vmem>>, %arg5: memref<1x32x64xbf16, #tpu.memory_space<vmem>>, %arg6: memref<1x32x32xbf16, #tpu.memory_space<vmem>>, %arg7: memref<8x8xf32, #tpu.memory_space<vmem>>, %arg8: memref<8x8xf32, #tpu.memory_space<vmem>>, %arg9: memref<1x8x32xf32, #tpu.memory_space<vmem>>, %arg10: memref<8x32xbf16, #tpu.memory_space<vmem>>, %arg11: memref<8x4xf32, #tpu.memory_space<vmem>>, %arg12: memref<8x4xf32, #tpu.memory_space<vmem>>, %arg13: memref<8x32xf32, #tpu.memory_space<vmem>>) attributes {dimension_semantics = [#tpu.dimension_semantics<parallel>, #tpu.dimension_semantics<arbitrary>, #tpu.dimension_semantics<arbitrary>], iteration_bounds = array<i64: 2, 1, 1>, scalar_prefetch = 0 : i64, scratch_operands = 4 : i64, tpu.core_type = #tpu.core_type<tc>, window_params = [{transform_indices = @transform_0, window_bounds = array<i64: 1, 8, 32>}, {transform_indices = @transform_1, window_bounds = array<i64: 1, 32, 32>}, {transform_indices = @transform_2, window_bounds = array<i64: 1, 32, 64>}, {transform_indices = @transform_3, window_bounds = array<i64: 1, 32, 32>}, {pipeline_mode = #tpu.pipeline_mode<synchronous>, transform_indices = @transform_4, window_bounds = array<i64: 8, 8>}, {pipeline_mode = #tpu.pipeline_mode<synchronous>, transform_indices = @transform_5, window_bounds = array<i64: 8, 8>}, {transform_indices = @transform_6, window_bounds = array<i64: 1, 8, 32>}]} {
    %c0_i32 = arith.constant 0 : i32
    %0 = arith.cmpi eq, %arg1, %c0_i32 : i32
    %c0_i32_0 = arith.constant 0 : i32
    %1 = arith.cmpi eq, %arg2, %c0_i32_0 : i32
    %2 = arith.andi %0, %1 : i1
    %3 = arith.extui %2 : i1 to i32
    %c0_i32_1 = arith.constant 0 : i32
    %4 = arith.cmpi ne, %3, %c0_i32_1 : i32
    scf.if %4 {
      %cst_82 = arith.constant 0.000000e+00 : f32
      %176 = vector.broadcast %cst_82 : f32 to vector<1x8x32xf32>
      %c0_83 = arith.constant 0 : index
      %c0_84 = arith.constant 0 : index
      %c0_85 = arith.constant 0 : index
      %177 = vector.load %arg9[%c0_83, %c0_84, %c0_85] : memref<1x8x32xf32, #tpu.memory_space<vmem>>, vector<1x8x32xf32>
      tpu.vector_store %arg9[%c0_83, %c0_84, %c0_85], %176 {strides = array<i32>} : memref<1x8x32xf32, #tpu.memory_space<vmem>>, vector<1x8x32xf32>,
    } else {
    }
    %c0_i32_2 = arith.constant 0 : i32
    %5 = arith.cmpi eq, %arg2, %c0_i32_2 : i32
    %6 = arith.extui %5 : i1 to i32
    %c0_i32_3 = arith.constant 0 : i32
    %7 = arith.cmpi ne, %6, %c0_i32_3 : i32
    scf.if %7 {
      %c0_82 = arith.constant 0 : index
      %c0_83 = arith.constant 0 : index
      %c0_84 = arith.constant 0 : index
      %176 = vector.load %arg3[%c0_82, %c0_83, %c0_84] : memref<1x8x32xbf16, #tpu.memory_space<vmem>>, vector<1x8x32xbf16>
      %177 = vector.shape_cast %176 : vector<1x8x32xbf16> to vector<8x32xbf16>
      %c0_85 = arith.constant 0 : index
      %c0_86 = arith.constant 0 : index
      %c0_87 = arith.constant 0 : index
      %178 = vector.load %arg4[%c0_85, %c0_86, %c0_87] : memref<1x32x32xbf16, #tpu.memory_space<vmem>>, vector<1x32x32xbf16>
      %179 = vector.shape_cast %178 : vector<1x32x32xbf16> to vector<32x32xbf16>
      %cst_88 = arith.constant dense<0.000000e+00> : vector<8x32xf32>
      %180 = tpu.matmul %177, %179, %cst_88 {dimension_numbers = #tpu.dot_dimension_numbers<[1], [0], [0], [1], [0, 0, 1, 1], [], []>} : vector<8x32xbf16>, vector<32x32xbf16>, vector<8x32xf32> -> vector<8x32xf32>
      %c0_89 = arith.constant 0 : index
      %c0_90 = arith.constant 0 : index
      %181 = vector.load %arg7[%c0_89, %c0_90] : memref<8x8xf32, #tpu.memory_space<vmem>>, vector<8x8xf32>
      %c0_91 = arith.constant 0 : index
      %c0_92 = arith.constant 0 : index
      %182 = vector.load %arg8[%c0_91, %c0_92] : memref<8x8xf32, #tpu.memory_space<vmem>>, vector<8x8xf32>
      %183 = vector.extract_strided_slice %180 {offsets = [0, 0], sizes = [8, 8], strides = [1, 1]} : vector<8x32xf32> to vector<8x8xf32>
      %184 = arith.mulf %183, %181 : vector<8x8xf32>
      %185 = vector.extract_strided_slice %183 {offsets = [0, 4], sizes = [8, 4], strides = [1, 1]} : vector<8x8xf32> to vector<8x4xf32>
      %186 = vector.extract_strided_slice %183 {offsets = [0, 0], sizes = [8, 4], strides = [1, 1]} : vector<8x8xf32> to vector<8x4xf32>
      %187 = tpu.concatenate %185, %186 in 1 : vector<8x4xf32>, vector<8x4xf32> -> vector<8x8xf32>
      %188 = arith.mulf %187, %182 : vector<8x8xf32>
      %189 = arith.addf %184, %188 : vector<8x8xf32>
      %190 = vector.extract_strided_slice %180 {offsets = [0, 8], sizes = [8, 8], strides = [1, 1]} : vector<8x32xf32> to vector<8x8xf32>
      %191 = arith.mulf %190, %181 : vector<8x8xf32>
      %192 = vector.extract_strided_slice %190 {offsets = [0, 4], sizes = [8, 4], strides = [1, 1]} : vector<8x8xf32> to vector<8x4xf32>
      %193 = vector.extract_strided_slice %190 {offsets = [0, 0], sizes = [8, 4], strides = [1, 1]} : vector<8x8xf32> to vector<8x4xf32>
      %194 = tpu.concatenate %192, %193 in 1 : vector<8x4xf32>, vector<8x4xf32> -> vector<8x8xf32>
      %195 = arith.mulf %194, %182 : vector<8x8xf32>
      %196 = arith.addf %191, %195 : vector<8x8xf32>
      %197 = vector.extract_strided_slice %180 {offsets = [0, 16], sizes = [8, 8], strides = [1, 1]} : vector<8x32xf32> to vector<8x8xf32>
      %198 = arith.mulf %197, %181 : vector<8x8xf32>
      %199 = vector.extract_strided_slice %197 {offsets = [0, 4], sizes = [8, 4], strides = [1, 1]} : vector<8x8xf32> to vector<8x4xf32>
      %200 = vector.extract_strided_slice %197 {offsets = [0, 0], sizes = [8, 4], strides = [1, 1]} : vector<8x8xf32> to vector<8x4xf32>
      %201 = tpu.concatenate %199, %200 in 1 : vector<8x4xf32>, vector<8x4xf32> -> vector<8x8xf32>
      %202 = arith.mulf %201, %182 : vector<8x8xf32>
      %203 = arith.addf %198, %202 : vector<8x8xf32>
      %204 = vector.extract_strided_slice %180 {offsets = [0, 24], sizes = [8, 8], strides = [1, 1]} : vector<8x32xf32> to vector<8x8xf32>
      %205 = arith.mulf %204, %181 : vector<8x8xf32>
      %206 = vector.extract_strided_slice %204 {offsets = [0, 4], sizes = [8, 4], strides = [1, 1]} : vector<8x8xf32> to vector<8x4xf32>
      %207 = vector.extract_strided_slice %204 {offsets = [0, 0], sizes = [8, 4], strides = [1, 1]} : vector<8x8xf32> to vector<8x4xf32>
      %208 = tpu.concatenate %206, %207 in 1 : vector<8x4xf32>, vector<8x4xf32> -> vector<8x8xf32>
      %209 = arith.mulf %208, %182 : vector<8x8xf32>
      %210 = arith.addf %205, %209 : vector<8x8xf32>
      %211 = tpu.concatenate %189, %196, %203, %210 in 1 : vector<8x8xf32>, vector<8x8xf32>, vector<8x8xf32>, vector<8x8xf32> -> vector<8x32xf32>
      %212 = arith.truncf %211 : vector<8x32xf32> to vector<8x32xbf16>
      %c0_93 = arith.constant 0 : index
      %c0_94 = arith.constant 0 : index
      %213 = vector.load %arg10[%c0_93, %c0_94] : memref<8x32xbf16, #tpu.memory_space<vmem>>, vector<8x32xbf16>
      tpu.vector_store %arg10[%c0_93, %c0_94], %212 {strides = array<i32>} : memref<8x32xbf16, #tpu.memory_space<vmem>>, vector<8x32xbf16>,
      %cst_95 = arith.constant -1.000000e+30 : f32
      %214 = vector.broadcast %cst_95 : f32 to vector<8x4xf32>
      %c0_96 = arith.constant 0 : index
      %c0_97 = arith.constant 0 : index
      %215 = vector.load %arg11[%c0_96, %c0_97] : memref<8x4xf32, #tpu.memory_space<vmem>>, vector<8x4xf32>
      tpu.vector_store %arg11[%c0_96, %c0_97], %214 {strides = array<i32>} : memref<8x4xf32, #tpu.memory_space<vmem>>, vector<8x4xf32>,
      %cst_98 = arith.constant 0.000000e+00 : f32
      %216 = vector.broadcast %cst_98 : f32 to vector<8x4xf32>
      %c0_99 = arith.constant 0 : index
      %c0_100 = arith.constant 0 : index
      %217 = vector.load %arg12[%c0_99, %c0_100] : memref<8x4xf32, #tpu.memory_space<vmem>>, vector<8x4xf32>
      tpu.vector_store %arg12[%c0_99, %c0_100], %216 {strides = array<i32>} : memref<8x4xf32, #tpu.memory_space<vmem>>, vector<8x4xf32>,
      %cst_101 = arith.constant 0.000000e+00 : f32
      %218 = vector.broadcast %cst_101 : f32 to vector<8x32xf32>
      %c0_102 = arith.constant 0 : index
      %c0_103 = arith.constant 0 : index
      %219 = vector.load %arg13[%c0_102, %c0_103] : memref<8x32xf32, #tpu.memory_space<vmem>>, vector<8x32xf32>
      tpu.vector_store %arg13[%c0_102, %c0_103], %218 {strides = array<i32>} : memref<8x32xf32, #tpu.memory_space<vmem>>, vector<8x32xf32>,
    } else {
    }
    %c8_i32 = arith.constant 8 : i32
    %8 = arith.muli %arg2, %c8_i32 : i32
    %9 = tpu.assume_multiple %8, 8 : i32
    %c0 = arith.constant 0 : index
    %10 = arith.index_cast %9 : i32 to index
    %c0_4 = arith.constant 0 : index
    %11 = vector.load %arg3[%c0, %10, %c0_4] : memref<1x8x32xbf16, #tpu.memory_space<vmem>>, vector<1x8x32xbf16>
    %12 = vector.shape_cast %11 : vector<1x8x32xbf16> to vector<8x32xbf16>
    %c0_5 = arith.constant 0 : index
    %c0_6 = arith.constant 0 : index
    %c0_7 = arith.constant 0 : index
    %13 = vector.load %arg5[%c0_5, %c0_6, %c0_7] : memref<1x32x64xbf16, #tpu.memory_space<vmem>>, vector<1x32x64xbf16>
    %14 = vector.shape_cast %13 : vector<1x32x64xbf16> to vector<32x64xbf16>
    %cst = arith.constant dense<0.000000e+00> : vector<8x64xf32>
    %15 = tpu.matmul %12, %14, %cst {dimension_numbers = #tpu.dot_dimension_numbers<[1], [0], [0], [1], [0, 0, 1, 1], [], []>} : vector<8x32xbf16>, vector<32x64xbf16>, vector<8x64xf32> -> vector<8x64xf32>
    %16 = arith.index_cast %9 : i32 to index
    %c0_8 = arith.constant 0 : index
    %17 = vector.load %arg7[%16, %c0_8] : memref<8x8xf32, #tpu.memory_space<vmem>>, vector<8x8xf32>
    %18 = arith.index_cast %9 : i32 to index
    %c0_9 = arith.constant 0 : index
    %19 = vector.load %arg8[%18, %c0_9] : memref<8x8xf32, #tpu.memory_space<vmem>>, vector<8x8xf32>
    %20 = tpu.iota {dimensions = array<i32: 0>} : vector<8x8xi32>
    %21 = tpu.iota {dimensions = array<i32: 1>} : vector<8x8xi32>
    %22 = vector.broadcast %9 : i32 to vector<8x8xi32>
    %23 = arith.addi %22, %21 : vector<8x8xi32>
    %24 = arith.cmpi sle, %23, %20 : vector<8x8xi32>
    %25 = vector.extract_strided_slice %15 {offsets = [0, 0], sizes = [8, 8], strides = [1, 1]} : vector<8x64xf32> to vector<8x8xf32>
    %26 = vector.extract_strided_slice %15 {offsets = [0, 32], sizes = [8, 8], strides = [1, 1]} : vector<8x64xf32> to vector<8x8xf32>
    %27 = arith.truncf %26 : vector<8x8xf32> to vector<8x8xbf16>
    %28 = arith.mulf %25, %17 : vector<8x8xf32>
    %29 = vector.extract_strided_slice %25 {offsets = [0, 4], sizes = [8, 4], strides = [1, 1]} : vector<8x8xf32> to vector<8x4xf32>
    %30 = vector.extract_strided_slice %25 {offsets = [0, 0], sizes = [8, 4], strides = [1, 1]} : vector<8x8xf32> to vector<8x4xf32>
    %31 = tpu.concatenate %29, %30 in 1 : vector<8x4xf32>, vector<8x4xf32> -> vector<8x8xf32>
    %32 = arith.mulf %31, %19 : vector<8x8xf32>
    %33 = arith.addf %28, %32 : vector<8x8xf32>
    %34 = arith.truncf %33 : vector<8x8xf32> to vector<8x8xbf16>
    %c0_10 = arith.constant 0 : index
    %c0_11 = arith.constant 0 : index
    %35 = vector.load %arg10[%c0_10, %c0_11] : memref<8x32xbf16, #tpu.memory_space<vmem>>, vector<8x8xbf16>
    %cst_12 = arith.constant dense<0.000000e+00> : vector<8x8xf32>
    %36 = tpu.matmul %35, %34, %cst_12 {dimension_numbers = #tpu.dot_dimension_numbers<[1], [1], [0], [0], [0, 0, 1, 0], [], []>} : vector<8x8xbf16>, vector<8x8xbf16>, vector<8x8xf32> -> vector<8x8xf32>
    %cst_13 = arith.constant -1.000000e+30 : f32
    %37 = vector.broadcast %cst_13 : f32 to vector<8x8xf32>
    %38 = arith.select %24, %36, %37 : vector<8x8xi1>, vector<8x8xf32>
    %c0_14 = arith.constant 0 : index
    %c0_15 = arith.constant 0 : index
    %39 = vector.load %arg11[%c0_14, %c0_15] : memref<8x4xf32, #tpu.memory_space<vmem>>, vector<8x1xf32>
    %cst_16 = arith.constant dense<0xFF800000> : vector<8xf32>
    %40 = vector.multi_reduction <maximumf>, %38, %cst_16 [1] : vector<8x8xf32> to vector<8xf32>
    %41 = vector.shape_cast %40 : vector<8xf32> to vector<8x1xf32>
    %42 = arith.maximumf %39, %41 : vector<8x1xf32>
    %43 = arith.subf %39, %42 : vector<8x1xf32>
    %44 = math.exp %43 : vector<8x1xf32>
    %45 = vector.broadcast %42 : vector<8x1xf32> to vector<8x8xf32>
    %46 = arith.subf %38, %45 : vector<8x8xf32>
    %47 = math.exp %46 : vector<8x8xf32>
    %c0_17 = arith.constant 0 : index
    %c0_18 = arith.constant 0 : index
    %48 = vector.load %arg12[%c0_17, %c0_18] : memref<8x4xf32, #tpu.memory_space<vmem>>, vector<8x1xf32>
    %49 = arith.mulf %44, %48 : vector<8x1xf32>
    %cst_19 = arith.constant dense<0.000000e+00> : vector<8xf32>
    %50 = vector.multi_reduction <add>, %47, %cst_19 [1] : vector<8x8xf32> to vector<8xf32>
    %51 = vector.shape_cast %50 : vector<8xf32> to vector<8x1xf32>
    %52 = arith.addf %49, %51 : vector<8x1xf32>
    %c0_20 = arith.constant 0 : index
    %c0_21 = arith.constant 0 : index
    %53 = vector.load %arg12[%c0_20, %c0_21] : memref<8x4xf32, #tpu.memory_space<vmem>>, vector<8x1xf32>
    tpu.vector_store %arg12[%c0_20, %c0_21], %52 {strides = array<i32>} : memref<8x4xf32, #tpu.memory_space<vmem>>, vector<8x1xf32>,
    %c0_22 = arith.constant 0 : index
    %c0_23 = arith.constant 0 : index
    %54 = vector.load %arg13[%c0_22, %c0_23] : memref<8x32xf32, #tpu.memory_space<vmem>>, vector<8x8xf32>
    %55 = vector.broadcast %44 : vector<8x1xf32> to vector<8x8xf32>
    %56 = arith.mulf %55, %54 : vector<8x8xf32>
    %57 = arith.truncf %47 : vector<8x8xf32> to vector<8x8xbf16>
    %cst_24 = arith.constant dense<0.000000e+00> : vector<8x8xf32>
    %58 = tpu.matmul %57, %27, %cst_24 {dimension_numbers = #tpu.dot_dimension_numbers<[1], [0], [0], [1], [0, 0, 1, 1], [], []>} : vector<8x8xbf16>, vector<8x8xbf16>, vector<8x8xf32> -> vector<8x8xf32>
    %59 = arith.addf %56, %58 : vector<8x8xf32>
    %c0_25 = arith.constant 0 : index
    %c0_26 = arith.constant 0 : index
    %60 = vector.load %arg13[%c0_25, %c0_26] : memref<8x32xf32, #tpu.memory_space<vmem>>, vector<8x8xf32>
    tpu.vector_store %arg13[%c0_25, %c0_26], %59 {strides = array<i32>} : memref<8x32xf32, #tpu.memory_space<vmem>>, vector<8x8xf32>,
    %c0_27 = arith.constant 0 : index
    %c0_28 = arith.constant 0 : index
    %61 = vector.load %arg11[%c0_27, %c0_28] : memref<8x4xf32, #tpu.memory_space<vmem>>, vector<8x1xf32>
    tpu.vector_store %arg11[%c0_27, %c0_28], %42 {strides = array<i32>} : memref<8x4xf32, #tpu.memory_space<vmem>>, vector<8x1xf32>,
    %62 = vector.extract_strided_slice %15 {offsets = [0, 8], sizes = [8, 8], strides = [1, 1]} : vector<8x64xf32> to vector<8x8xf32>
    %63 = vector.extract_strided_slice %15 {offsets = [0, 40], sizes = [8, 8], strides = [1, 1]} : vector<8x64xf32> to vector<8x8xf32>
    %64 = arith.truncf %63 : vector<8x8xf32> to vector<8x8xbf16>
    %65 = arith.mulf %62, %17 : vector<8x8xf32>
    %66 = vector.extract_strided_slice %62 {offsets = [0, 4], sizes = [8, 4], strides = [1, 1]} : vector<8x8xf32> to vector<8x4xf32>
    %67 = vector.extract_strided_slice %62 {offsets = [0, 0], sizes = [8, 4], strides = [1, 1]} : vector<8x8xf32> to vector<8x4xf32>
    %68 = tpu.concatenate %66, %67 in 1 : vector<8x4xf32>, vector<8x4xf32> -> vector<8x8xf32>
    %69 = arith.mulf %68, %19 : vector<8x8xf32>
    %70 = arith.addf %65, %69 : vector<8x8xf32>
    %71 = arith.truncf %70 : vector<8x8xf32> to vector<8x8xbf16>
    %c0_29 = arith.constant 0 : index
    %c8 = arith.constant 8 : index
    %72 = vector.load %arg10[%c0_29, %c8] : memref<8x32xbf16, #tpu.memory_space<vmem>>, vector<8x8xbf16>
    %cst_30 = arith.constant dense<0.000000e+00> : vector<8x8xf32>
    %73 = tpu.matmul %72, %71, %cst_30 {dimension_numbers = #tpu.dot_dimension_numbers<[1], [1], [0], [0], [0, 0, 1, 0], [], []>} : vector<8x8xbf16>, vector<8x8xbf16>, vector<8x8xf32> -> vector<8x8xf32>
    %cst_31 = arith.constant -1.000000e+30 : f32
    %74 = vector.broadcast %cst_31 : f32 to vector<8x8xf32>
    %75 = arith.select %24, %73, %74 : vector<8x8xi1>, vector<8x8xf32>
    %c0_32 = arith.constant 0 : index
    %c1 = arith.constant 1 : index
    %76 = vector.load %arg11[%c0_32, %c1] : memref<8x4xf32, #tpu.memory_space<vmem>>, vector<8x1xf32>
    %cst_33 = arith.constant dense<0xFF800000> : vector<8xf32>
    %77 = vector.multi_reduction <maximumf>, %75, %cst_33 [1] : vector<8x8xf32> to vector<8xf32>
    %78 = vector.shape_cast %77 : vector<8xf32> to vector<8x1xf32>
    %79 = arith.maximumf %76, %78 : vector<8x1xf32>
    %80 = arith.subf %76, %79 : vector<8x1xf32>
    %81 = math.exp %80 : vector<8x1xf32>
    %82 = vector.broadcast %79 : vector<8x1xf32> to vector<8x8xf32>
    %83 = arith.subf %75, %82 : vector<8x8xf32>
    %84 = math.exp %83 : vector<8x8xf32>
    %c0_34 = arith.constant 0 : index
    %c1_35 = arith.constant 1 : index
    %85 = vector.load %arg12[%c0_34, %c1_35] : memref<8x4xf32, #tpu.memory_space<vmem>>, vector<8x1xf32>
    %86 = arith.mulf %81, %85 : vector<8x1xf32>
    %cst_36 = arith.constant dense<0.000000e+00> : vector<8xf32>
    %87 = vector.multi_reduction <add>, %84, %cst_36 [1] : vector<8x8xf32> to vector<8xf32>
    %88 = vector.shape_cast %87 : vector<8xf32> to vector<8x1xf32>
    %89 = arith.addf %86, %88 : vector<8x1xf32>
    %c0_37 = arith.constant 0 : index
    %c1_38 = arith.constant 1 : index
    %90 = vector.load %arg12[%c0_37, %c1_38] : memref<8x4xf32, #tpu.memory_space<vmem>>, vector<8x1xf32>
    tpu.vector_store %arg12[%c0_37, %c1_38], %89 {strides = array<i32>} : memref<8x4xf32, #tpu.memory_space<vmem>>, vector<8x1xf32>,
    %c0_39 = arith.constant 0 : index
    %c8_40 = arith.constant 8 : index
    %91 = vector.load %arg13[%c0_39, %c8_40] : memref<8x32xf32, #tpu.memory_space<vmem>>, vector<8x8xf32>
    %92 = vector.broadcast %81 : vector<8x1xf32> to vector<8x8xf32>
    %93 = arith.mulf %92, %91 : vector<8x8xf32>
    %94 = arith.truncf %84 : vector<8x8xf32> to vector<8x8xbf16>
    %cst_41 = arith.constant dense<0.000000e+00> : vector<8x8xf32>
    %95 = tpu.matmul %94, %64, %cst_41 {dimension_numbers = #tpu.dot_dimension_numbers<[1], [0], [0], [1], [0, 0, 1, 1], [], []>} : vector<8x8xbf16>, vector<8x8xbf16>, vector<8x8xf32> -> vector<8x8xf32>
    %96 = arith.addf %93, %95 : vector<8x8xf32>
    %c0_42 = arith.constant 0 : index
    %c8_43 = arith.constant 8 : index
    %97 = vector.load %arg13[%c0_42, %c8_43] : memref<8x32xf32, #tpu.memory_space<vmem>>, vector<8x8xf32>
    tpu.vector_store %arg13[%c0_42, %c8_43], %96 {strides = array<i32>} : memref<8x32xf32, #tpu.memory_space<vmem>>, vector<8x8xf32>,
    %c0_44 = arith.constant 0 : index
    %c1_45 = arith.constant 1 : index
    %98 = vector.load %arg11[%c0_44, %c1_45] : memref<8x4xf32, #tpu.memory_space<vmem>>, vector<8x1xf32>
    tpu.vector_store %arg11[%c0_44, %c1_45], %79 {strides = array<i32>} : memref<8x4xf32, #tpu.memory_space<vmem>>, vector<8x1xf32>,
    %99 = vector.extract_strided_slice %15 {offsets = [0, 16], sizes = [8, 8], strides = [1, 1]} : vector<8x64xf32> to vector<8x8xf32>
    %100 = vector.extract_strided_slice %15 {offsets = [0, 48], sizes = [8, 8], strides = [1, 1]} : vector<8x64xf32> to vector<8x8xf32>
    %101 = arith.truncf %100 : vector<8x8xf32> to vector<8x8xbf16>
    %102 = arith.mulf %99, %17 : vector<8x8xf32>
    %103 = vector.extract_strided_slice %99 {offsets = [0, 4], sizes = [8, 4], strides = [1, 1]} : vector<8x8xf32> to vector<8x4xf32>
    %104 = vector.extract_strided_slice %99 {offsets = [0, 0], sizes = [8, 4], strides = [1, 1]} : vector<8x8xf32> to vector<8x4xf32>
    %105 = tpu.concatenate %103, %104 in 1 : vector<8x4xf32>, vector<8x4xf32> -> vector<8x8xf32>
    %106 = arith.mulf %105, %19 : vector<8x8xf32>
    %107 = arith.addf %102, %106 : vector<8x8xf32>
    %108 = arith.truncf %107 : vector<8x8xf32> to vector<8x8xbf16>
    %c0_46 = arith.constant 0 : index
    %c16 = arith.constant 16 : index
    %109 = vector.load %arg10[%c0_46, %c16] : memref<8x32xbf16, #tpu.memory_space<vmem>>, vector<8x8xbf16>
    %cst_47 = arith.constant dense<0.000000e+00> : vector<8x8xf32>
    %110 = tpu.matmul %109, %108, %cst_47 {dimension_numbers = #tpu.dot_dimension_numbers<[1], [1], [0], [0], [0, 0, 1, 0], [], []>} : vector<8x8xbf16>, vector<8x8xbf16>, vector<8x8xf32> -> vector<8x8xf32>
    %cst_48 = arith.constant -1.000000e+30 : f32
    %111 = vector.broadcast %cst_48 : f32 to vector<8x8xf32>
    %112 = arith.select %24, %110, %111 : vector<8x8xi1>, vector<8x8xf32>
    %c0_49 = arith.constant 0 : index
    %c2 = arith.constant 2 : index
    %113 = vector.load %arg11[%c0_49, %c2] : memref<8x4xf32, #tpu.memory_space<vmem>>, vector<8x1xf32>
    %cst_50 = arith.constant dense<0xFF800000> : vector<8xf32>
    %114 = vector.multi_reduction <maximumf>, %112, %cst_50 [1] : vector<8x8xf32> to vector<8xf32>
    %115 = vector.shape_cast %114 : vector<8xf32> to vector<8x1xf32>
    %116 = arith.maximumf %113, %115 : vector<8x1xf32>
    %117 = arith.subf %113, %116 : vector<8x1xf32>
    %118 = math.exp %117 : vector<8x1xf32>
    %119 = vector.broadcast %116 : vector<8x1xf32> to vector<8x8xf32>
    %120 = arith.subf %112, %119 : vector<8x8xf32>
    %121 = math.exp %120 : vector<8x8xf32>
    %c0_51 = arith.constant 0 : index
    %c2_52 = arith.constant 2 : index
    %122 = vector.load %arg12[%c0_51, %c2_52] : memref<8x4xf32, #tpu.memory_space<vmem>>, vector<8x1xf32>
    %123 = arith.mulf %118, %122 : vector<8x1xf32>
    %cst_53 = arith.constant dense<0.000000e+00> : vector<8xf32>
    %124 = vector.multi_reduction <add>, %121, %cst_53 [1] : vector<8x8xf32> to vector<8xf32>
    %125 = vector.shape_cast %124 : vector<8xf32> to vector<8x1xf32>
    %126 = arith.addf %123, %125 : vector<8x1xf32>
    %c0_54 = arith.constant 0 : index
    %c2_55 = arith.constant 2 : index
    %127 = vector.load %arg12[%c0_54, %c2_55] : memref<8x4xf32, #tpu.memory_space<vmem>>, vector<8x1xf32>
    tpu.vector_store %arg12[%c0_54, %c2_55], %126 {strides = array<i32>} : memref<8x4xf32, #tpu.memory_space<vmem>>, vector<8x1xf32>,
    %c0_56 = arith.constant 0 : index
    %c16_57 = arith.constant 16 : index
    %128 = vector.load %arg13[%c0_56, %c16_57] : memref<8x32xf32, #tpu.memory_space<vmem>>, vector<8x8xf32>
    %129 = vector.broadcast %118 : vector<8x1xf32> to vector<8x8xf32>
    %130 = arith.mulf %129, %128 : vector<8x8xf32>
    %131 = arith.truncf %121 : vector<8x8xf32> to vector<8x8xbf16>
    %cst_58 = arith.constant dense<0.000000e+00> : vector<8x8xf32>
    %132 = tpu.matmul %131, %101, %cst_58 {dimension_numbers = #tpu.dot_dimension_numbers<[1], [0], [0], [1], [0, 0, 1, 1], [], []>} : vector<8x8xbf16>, vector<8x8xbf16>, vector<8x8xf32> -> vector<8x8xf32>
    %133 = arith.addf %130, %132 : vector<8x8xf32>
    %c0_59 = arith.constant 0 : index
    %c16_60 = arith.constant 16 : index
    %134 = vector.load %arg13[%c0_59, %c16_60] : memref<8x32xf32, #tpu.memory_space<vmem>>, vector<8x8xf32>
    tpu.vector_store %arg13[%c0_59, %c16_60], %133 {strides = array<i32>} : memref<8x32xf32, #tpu.memory_space<vmem>>, vector<8x8xf32>,
    %c0_61 = arith.constant 0 : index
    %c2_62 = arith.constant 2 : index
    %135 = vector.load %arg11[%c0_61, %c2_62] : memref<8x4xf32, #tpu.memory_space<vmem>>, vector<8x1xf32>
    tpu.vector_store %arg11[%c0_61, %c2_62], %116 {strides = array<i32>} : memref<8x4xf32, #tpu.memory_space<vmem>>, vector<8x1xf32>,
    %136 = vector.extract_strided_slice %15 {offsets = [0, 24], sizes = [8, 8], strides = [1, 1]} : vector<8x64xf32> to vector<8x8xf32>
    %137 = vector.extract_strided_slice %15 {offsets = [0, 56], sizes = [8, 8], strides = [1, 1]} : vector<8x64xf32> to vector<8x8xf32>
    %138 = arith.truncf %137 : vector<8x8xf32> to vector<8x8xbf16>
    %139 = arith.mulf %136, %17 : vector<8x8xf32>
    %140 = vector.extract_strided_slice %136 {offsets = [0, 4], sizes = [8, 4], strides = [1, 1]} : vector<8x8xf32> to vector<8x4xf32>
    %141 = vector.extract_strided_slice %136 {offsets = [0, 0], sizes = [8, 4], strides = [1, 1]} : vector<8x8xf32> to vector<8x4xf32>
    %142 = tpu.concatenate %140, %141 in 1 : vector<8x4xf32>, vector<8x4xf32> -> vector<8x8xf32>
    %143 = arith.mulf %142, %19 : vector<8x8xf32>
    %144 = arith.addf %139, %143 : vector<8x8xf32>
    %145 = arith.truncf %144 : vector<8x8xf32> to vector<8x8xbf16>
    %c0_63 = arith.constant 0 : index
    %c24 = arith.constant 24 : index
    %146 = vector.load %arg10[%c0_63, %c24] : memref<8x32xbf16, #tpu.memory_space<vmem>>, vector<8x8xbf16>
    %cst_64 = arith.constant dense<0.000000e+00> : vector<8x8xf32>
    %147 = tpu.matmul %146, %145, %cst_64 {dimension_numbers = #tpu.dot_dimension_numbers<[1], [1], [0], [0], [0, 0, 1, 0], [], []>} : vector<8x8xbf16>, vector<8x8xbf16>, vector<8x8xf32> -> vector<8x8xf32>
    %cst_65 = arith.constant -1.000000e+30 : f32
    %148 = vector.broadcast %cst_65 : f32 to vector<8x8xf32>
    %149 = arith.select %24, %147, %148 : vector<8x8xi1>, vector<8x8xf32>
    %c0_66 = arith.constant 0 : index
    %c3 = arith.constant 3 : index
    %150 = vector.load %arg11[%c0_66, %c3] : memref<8x4xf32, #tpu.memory_space<vmem>>, vector<8x1xf32>
    %cst_67 = arith.constant dense<0xFF800000> : vector<8xf32>
    %151 = vector.multi_reduction <maximumf>, %149, %cst_67 [1] : vector<8x8xf32> to vector<8xf32>
    %152 = vector.shape_cast %151 : vector<8xf32> to vector<8x1xf32>
    %153 = arith.maximumf %150, %152 : vector<8x1xf32>
    %154 = arith.subf %150, %153 : vector<8x1xf32>
    %155 = math.exp %154 : vector<8x1xf32>
    %156 = vector.broadcast %153 : vector<8x1xf32> to vector<8x8xf32>
    %157 = arith.subf %149, %156 : vector<8x8xf32>
    %158 = math.exp %157 : vector<8x8xf32>
    %c0_68 = arith.constant 0 : index
    %c3_69 = arith.constant 3 : index
    %159 = vector.load %arg12[%c0_68, %c3_69] : memref<8x4xf32, #tpu.memory_space<vmem>>, vector<8x1xf32>
    %160 = arith.mulf %155, %159 : vector<8x1xf32>
    %cst_70 = arith.constant dense<0.000000e+00> : vector<8xf32>
    %161 = vector.multi_reduction <add>, %158, %cst_70 [1] : vector<8x8xf32> to vector<8xf32>
    %162 = vector.shape_cast %161 : vector<8xf32> to vector<8x1xf32>
    %163 = arith.addf %160, %162 : vector<8x1xf32>
    %c0_71 = arith.constant 0 : index
    %c3_72 = arith.constant 3 : index
    %164 = vector.load %arg12[%c0_71, %c3_72] : memref<8x4xf32, #tpu.memory_space<vmem>>, vector<8x1xf32>
    tpu.vector_store %arg12[%c0_71, %c3_72], %163 {strides = array<i32>} : memref<8x4xf32, #tpu.memory_space<vmem>>, vector<8x1xf32>,
    %c0_73 = arith.constant 0 : index
    %c24_74 = arith.constant 24 : index
    %165 = vector.load %arg13[%c0_73, %c24_74] : memref<8x32xf32, #tpu.memory_space<vmem>>, vector<8x8xf32>
    %166 = vector.broadcast %155 : vector<8x1xf32> to vector<8x8xf32>
    %167 = arith.mulf %166, %165 : vector<8x8xf32>
    %168 = arith.truncf %158 : vector<8x8xf32> to vector<8x8xbf16>
    %cst_75 = arith.constant dense<0.000000e+00> : vector<8x8xf32>
    %169 = tpu.matmul %168, %138, %cst_75 {dimension_numbers = #tpu.dot_dimension_numbers<[1], [0], [0], [1], [0, 0, 1, 1], [], []>} : vector<8x8xbf16>, vector<8x8xbf16>, vector<8x8xf32> -> vector<8x8xf32>
    %170 = arith.addf %167, %169 : vector<8x8xf32>
    %c0_76 = arith.constant 0 : index
    %c24_77 = arith.constant 24 : index
    %171 = vector.load %arg13[%c0_76, %c24_77] : memref<8x32xf32, #tpu.memory_space<vmem>>, vector<8x8xf32>
    tpu.vector_store %arg13[%c0_76, %c24_77], %170 {strides = array<i32>} : memref<8x32xf32, #tpu.memory_space<vmem>>, vector<8x8xf32>,
    %c0_78 = arith.constant 0 : index
    %c3_79 = arith.constant 3 : index
    %172 = vector.load %arg11[%c0_78, %c3_79] : memref<8x4xf32, #tpu.memory_space<vmem>>, vector<8x1xf32>
    tpu.vector_store %arg11[%c0_78, %c3_79], %153 {strides = array<i32>} : memref<8x4xf32, #tpu.memory_space<vmem>>, vector<8x1xf32>,
    %c0_i32_80 = arith.constant 0 : i32
    %173 = arith.cmpi eq, %arg2, %c0_i32_80 : i32
    %174 = arith.extui %173 : i1 to i32
    %c0_i32_81 = arith.constant 0 : i32
    %175 = arith.cmpi ne, %174, %c0_i32_81 : i32
    scf.if %175 {
      %c0_82 = arith.constant 0 : index
      %c0_83 = arith.constant 0 : index
      %176 = vector.load %arg12[%c0_82, %c0_83] : memref<8x4xf32, #tpu.memory_space<vmem>>, vector<8x1xf32>
      %177 = tpu.reciprocal %176 {approx = true} : vector<8x1xf32> -> vector<8x1xf32>
      %c0_84 = arith.constant 0 : index
      %c0_85 = arith.constant 0 : index
      %178 = vector.load %arg13[%c0_84, %c0_85] : memref<8x32xf32, #tpu.memory_space<vmem>>, vector<8x8xf32>
      %179 = vector.broadcast %177 : vector<8x1xf32> to vector<8x8xf32>
      %180 = arith.mulf %178, %179 : vector<8x8xf32>
      %c0_86 = arith.constant 0 : index
      %c1_87 = arith.constant 1 : index
      %181 = vector.load %arg12[%c0_86, %c1_87] : memref<8x4xf32, #tpu.memory_space<vmem>>, vector<8x1xf32>
      %182 = tpu.reciprocal %181 {approx = true} : vector<8x1xf32> -> vector<8x1xf32>
      %c0_88 = arith.constant 0 : index
      %c8_89 = arith.constant 8 : index
      %183 = vector.load %arg13[%c0_88, %c8_89] : memref<8x32xf32, #tpu.memory_space<vmem>>, vector<8x8xf32>
      %184 = vector.broadcast %182 : vector<8x1xf32> to vector<8x8xf32>
      %185 = arith.mulf %183, %184 : vector<8x8xf32>
      %c0_90 = arith.constant 0 : index
      %c2_91 = arith.constant 2 : index
      %186 = vector.load %arg12[%c0_90, %c2_91] : memref<8x4xf32, #tpu.memory_space<vmem>>, vector<8x1xf32>
      %187 = tpu.reciprocal %186 {approx = true} : vector<8x1xf32> -> vector<8x1xf32>
      %c0_92 = arith.constant 0 : index
      %c16_93 = arith.constant 16 : index
      %188 = vector.load %arg13[%c0_92, %c16_93] : memref<8x32xf32, #tpu.memory_space<vmem>>, vector<8x8xf32>
      %189 = vector.broadcast %187 : vector<8x1xf32> to vector<8x8xf32>
      %190 = arith.mulf %188, %189 : vector<8x8xf32>
      %c0_94 = arith.constant 0 : index
      %c3_95 = arith.constant 3 : index
      %191 = vector.load %arg12[%c0_94, %c3_95] : memref<8x4xf32, #tpu.memory_space<vmem>>, vector<8x1xf32>
      %192 = tpu.reciprocal %191 {approx = true} : vector<8x1xf32> -> vector<8x1xf32>
      %c0_96 = arith.constant 0 : index
      %c24_97 = arith.constant 24 : index
      %193 = vector.load %arg13[%c0_96, %c24_97] : memref<8x32xf32, #tpu.memory_space<vmem>>, vector<8x8xf32>
      %194 = vector.broadcast %192 : vector<8x1xf32> to vector<8x8xf32>
      %195 = arith.mulf %193, %194 : vector<8x8xf32>
      %196 = tpu.concatenate %180, %185, %190, %195 in 1 : vector<8x8xf32>, vector<8x8xf32>, vector<8x8xf32>, vector<8x8xf32> -> vector<8x32xf32>
      %197 = arith.truncf %196 : vector<8x32xf32> to vector<8x32xbf16>
      %c0_98 = arith.constant 0 : index
      %c0_99 = arith.constant 0 : index
      %c0_100 = arith.constant 0 : index
      %198 = vector.load %arg9[%c0_98, %c0_99, %c0_100] : memref<1x8x32xf32, #tpu.memory_space<vmem>>, vector<1x8x32xf32>
      %199 = vector.shape_cast %198 : vector<1x8x32xf32> to vector<8x32xf32>
      %c0_101 = arith.constant 0 : index
      %c0_102 = arith.constant 0 : index
      %c0_103 = arith.constant 0 : index
      %200 = vector.load %arg6[%c0_101, %c0_102, %c0_103] : memref<1x32x32xbf16, #tpu.memory_space<vmem>>, vector<1x32x32xbf16>
      %201 = vector.shape_cast %200 : vector<1x32x32xbf16> to vector<32x32xbf16>
      %cst_104 = arith.constant dense<0.000000e+00> : vector<8x32xf32>
      %202 = tpu.matmul %197, %201, %cst_104 {dimension_numbers = #tpu.dot_dimension_numbers<[1], [0], [0], [1], [0, 0, 1, 1], [], []>} : vector<8x32xbf16>, vector<32x32xbf16>, vector<8x32xf32> -> vector<8x32xf32>
      %203 = arith.addf %199, %202 : vector<8x32xf32>
      %c0_105 = arith.constant 0 : index
      %c0_106 = arith.constant 0 : index
      %c0_107 = arith.constant 0 : index
      %204 = vector.load %arg9[%c0_105, %c0_106, %c0_107] : memref<1x8x32xf32, #tpu.memory_space<vmem>>, vector<1x8x32xf32>
      %205 = vector.shape_cast %204 : vector<1x8x32xf32> to vector<8x32xf32>
      %206 = vector.shape_cast %203 : vector<8x32xf32> to vector<1x8x32xf32>
      tpu.vector_store %arg9[%c0_105, %c0_106, %c0_107], %206 {strides = array<i32>} : memref<1x8x32xf32, #tpu.memory_space<vmem>>, vector<1x8x32xf32>,
    } else {
    }
    return
  }
  func.func @transform_0(%arg0: i32, %arg1: i32, %arg2: i32) -> (i32, i32, i32) {
    %c0_i32 = arith.constant 0 : i32
    %c0_i32_0 = arith.constant 0 : i32
    %c0_i32_1 = arith.constant 0 : i32
    return %arg0, %c0_i32, %c0_i32_0 : i32, i32, i32
  }
  func.func @transform_1(%arg0: i32, %arg1: i32, %arg2: i32) -> (i32, i32, i32) {
    %c0_i32 = arith.constant 0 : i32
    %c0_i32_0 = arith.constant 0 : i32
    %c0_i32_1 = arith.constant 0 : i32
    return %arg1, %c0_i32, %c0_i32_0 : i32, i32, i32
  }
  func.func @transform_2(%arg0: i32, %arg1: i32, %arg2: i32) -> (i32, i32, i32) {
    %c0_i32 = arith.constant 0 : i32
    %c0_i32_0 = arith.constant 0 : i32
    %c0_i32_1 = arith.constant 0 : i32
    return %arg1, %c0_i32, %c0_i32_0 : i32, i32, i32
  }
  func.func @transform_3(%arg0: i32, %arg1: i32, %arg2: i32) -> (i32, i32, i32) {
    %c0_i32 = arith.constant 0 : i32
    %c0_i32_0 = arith.constant 0 : i32
    %c0_i32_1 = arith.constant 0 : i32
    return %arg1, %c0_i32, %c0_i32_0 : i32, i32, i32
  }
  func.func @transform_4(%arg0: i32, %arg1: i32, %arg2: i32) -> (i32, i32) {
    %c0_i32 = arith.constant 0 : i32
    %c0_i32_0 = arith.constant 0 : i32
    %c0_i32_1 = arith.constant 0 : i32
    return %c0_i32, %c0_i32_0 : i32, i32
  }
  func.func @transform_5(%arg0: i32, %arg1: i32, %arg2: i32) -> (i32, i32) {
    %c0_i32 = arith.constant 0 : i32
    %c0_i32_0 = arith.constant 0 : i32
    %c0_i32_1 = arith.constant 0 : i32
    return %c0_i32, %c0_i32_0 : i32, i32
  }
  func.func @transform_6(%arg0: i32, %arg1: i32, %arg2: i32) -> (i32, i32, i32) {
    %c0_i32 = arith.constant 0 : i32
    %c0_i32_0 = arith.constant 0 : i32
    %c0_i32_1 = arith.constant 0 : i32
    return %arg0, %c0_i32, %c0_i32_0 : i32, i32, i32
  }
}

</mosaic_0001>

<bundles_post_ra>
// kernel: tpu_custom_call.1
= control target key start
LH: loop header
LB: loop body
LE: loop exit
PB: predicated region body
PF: predicated region fallthrough
CT: control target
= control target key end

     0   :  { %s2523_s0 = inlined_call_operand.hbm [shape: bf16[2,8,32], index: 0, kind: input, shape index: {}]   ;;  %s2524_s1 = inlined_call_operand.hbm [shape: bf16[1,32,32], index: 1, kind: input, shape index: {}]   ;;  %s2525_s2 = inlined_call_operand.hbm [shape: bf16[1,32,64], index: 2, kind: input, shape index: {}]   ;;  %s2526_s3 = inlined_call_operand.hbm [shape: bf16[1,32,32], index: 3, kind: input, shape index: {}]   ;;  %s2527_s4 = inlined_call_operand.vmem [shape: f32[8,8], index: 4, kind: input, shape index: {}]   ;;  %s2528_s5 = inlined_call_operand.vmem [shape: f32[8,8], index: 5, kind: input, shape index: {}]   ;;  %s2529_s6 = inlined_call_operand.hbm [shape: f32[2,8,32], index: 6, kind: output, shape index: {}]  }
   0x1   :  { %2537 = sst [smem:[#allocation21_spill]] %s2529_s6 }
   0x2   :  { %11 = vsyncpa [#allocation7], 0 }
   0x3   :  { %13 = vsyncpa [#allocation7 + $0x1], 0 }
   0x4   :  { %14 = vsyncpa [#allocation10], 0 }
   0x5   :  { %15 = vsyncpa [#allocation13], 0 }
   0x6   :  { %16 = vsyncpa [#allocation8], 0 }
   0x7   :  { %18 = vsyncpa [#allocation8 + $0x1], 0  ;;  %s1990_s21 = smov 0   ;;  %s1992_s22 = smov 0  }
   0x8   :  { %s1994_s23 = smov 0   ;;  %s1996_s24 = smov 0  }
   0x9   :  { %s1998_s25 = smov 0   ;;  %s2000_s26 = smov 0  }
   0xa LB: > { %2538 = sst [smem:[#allocation19_spill]] %s1904_s21  ;;  %s1430_s27 = sadd.s32 4294967295, %s1924_s26   ;;  %s1924_s26 = sphi %s2000_s26, %s24_s26   ;;  %s1920_s25 = sphi %s1998_s25, %s2562_s25   ;;  %s1916_s24 = sphi %s1996_s24, %s2561_s24   ;;  %s1912_s23 = sphi %s1994_s23, %s2560_s23   ;;  %s1908_s22 = sphi %s1992_s22, %s2559_s22   ;;  %s1904_s21 = sphi %s1990_s21, %s2558_s21  }
   0xb   : > { %s1431_s28 = sadd.s32 4294967294, %s1924_s26   ;;  %p63_p0 = scmp.ne.s32.totalorder %s1908_s22, %s1904_s21 }
   0xc   : > { %p2024_p1 = scmp.eq.s32.totalorder %s1430_s27, 0  ;;  %p2028_p2 = scmp.eq.s32.totalorder %s1430_s27, 1 }
   0xd   : > { %p213_p3 = scmp.eq.s32.totalorder %s1431_s28, 1  ;;  %p1432_p5 = scmp.ge.s32.totalorder %s1924_s26, 1 }
   0xe   : > { %s2539_s29 = scalar_select %p2024_p1, 1, 0 }
   0xf   : > { %s2540_s30 = scalar_select %p2028_p2, 1, 0 }
  0x10   : > { %p2034_p4 = por %p2024_p1, %p63_p0  ;;  %p2039_p6 = por %p213_p3, %p63_p0 }
  0x11   : > { %p220_p7 = scmp.lt.s32.totalorder %s1924_s26, 3  ;;  %s1926_s10 = smov [#allocation9]  }
  0x12   : > { %s2541_s7 = scalar_select %p2034_p4, 1, 0 }
  0x13   : > { %s2542_s8 = scalar_select %p2039_p6, 1, 0 }
  0x14   : > { %p2044_p8 = pnand %p1432_p5, %p220_p7  ;;  %s235_s11 = sshll.u32 %s1926_s10, 4  ;;  %s2048_s11 = int_to_ptr.vmem [resolvable:$true] %s235_s11 }
  0x15   : > { %2543 = sst [smem:[#allocation20_spill]] %s2542_s8  ;;  %s1927_s13 = smov [#allocation11]  }
  0x16   : > { %s2544_s9 = scalar_select %p2044_p8, 1, 0 }
  0x17   : > { %p1582_p9 = pneg %p2044_p8  ;;  %s251_s14 = sshll.u32 %s1927_s13, 4  ;;  %s2059_s14 = int_to_ptr.vmem [resolvable:$true] %s251_s14 }
  0x18   : > { %s1928_s15 = smov [#allocation12]   ;;  %s1720_s19 = scalar_lea.hbm %s2524_s1, 256 }
  0x19   : > { %p2055_p11 = pnand %p1582_p9, %p2024_p1  ;;  %s2061_s16 = sshll.u32 %s1928_s15, 4  ;;  %s268_s16 = int_to_ptr.vmem [resolvable:$true] %s2061_s16 }
  0x1a   : > { %p1721_p12 = scmp.ne.s32.totalorder %s2524_s1, %s1720_s19  ;;  %p1727_p5 = scmp.lt.u32.totalorder %s1720_s19, %s2524_s1 }
  0x1b   : > { %p2071_p13 = pneg %p2055_p11 }
  0x1d   : > { %p1723_p0 = pnand %p2071_p13, %p1721_p12 }
  0x1f   : > { %p1724_p3 = pneg %p1723_p0 }
  0x21   : > { %p1729_p7 = pnand %p1727_p5, %p1724_p3 }
  0x23   : > { %1732 = shalt.err (!%p1729_p7)
}
  0x24   : > { %s1733_s15 = scalar_lea.vmem %s2048_s11, 256  ;;  %p1741_p1 = scmp.lt.s32.totalorder %s2048_s11, %s2048_s11 }
  0x25   : > { %p1734_p9 = scmp.ne.s32.totalorder %s2048_s11, %s1733_s15  ;;  %p1742_p4 = scmp.lt.s32.totalorder %s1733_s15, %s1733_s15 }
  0x27   : > { %p1736_p10 = pnand %p1734_p9, %p2071_p13  ;;  %p1743_p12 = por %p1742_p4, %p1741_p1 }
  0x29   : > { %p1737_p6 = pneg %p1736_p10 }
  0x2b   : > { %p1744_p0 = pnand %p1743_p12, %p1737_p6 }
  0x2d   : > { %1747 = shalt.err (!%p1744_p0)
}
  0x2e   : > { %s1929_s17 = smov 64   ;;  %s1930_s18 = smov 4  }
  0x2f   : > { %1585 = dma.hbm_to_vmem [thread:$0]  (!%p2055_p11), %s2524_s1, 256, %s2048_s11, [#allocation10], %s1929_s17, %s1929_s17, %s1930_s18  }
  0x30   : > { %s1748_s13 = scalar_lea.hbm %s2525_s2, 256 }
  0x31   : > { %p1749_p1 = scmp.ne.s32.totalorder %s2525_s2, %s1748_s13  ;;  %p1755_p10 = scmp.lt.u32.totalorder %s1748_s13, %s2525_s2 }
  0x33   : > { %p1751_p4 = pnand %p1749_p1, %p2071_p13 }
  0x35   : > { %p1752_p6 = pneg %p1751_p4 }
  0x37   : > { %p1757_p3 = pnand %p1755_p10, %p1752_p6 }
  0x39   : > { %1760 = shalt.err (!%p1757_p3)
}
  0x3a   : > { %s1761_s11 = scalar_lea.vmem %s2059_s14, 256  ;;  %p1769_p12 = scmp.lt.s32.totalorder %s2059_s14, %s2059_s14 }
  0x3b   : > { %p1762_p5 = scmp.ne.s32.totalorder %s2059_s14, %s1761_s11  ;;  %p1770_p0 = scmp.lt.s32.totalorder %s1761_s11, %s1761_s11 }
  0x3d   : > { %p1764_p7 = pnand %p1762_p5, %p2071_p13  ;;  %p1771_p1 = por %p1770_p0, %p1769_p12 }
  0x3f   : > { %p1765_p9 = pneg %p1764_p7 }
  0x41   : > { %p1772_p4 = pnand %p1771_p1, %p1765_p9 }
  0x43   : > { %1775 = shalt.err (!%p1772_p4)
}
  0x44   : > { %1588 = dma.hbm_to_vmem [thread:$0]  (!%p2055_p11), %s2525_s2, 256, %s2059_s14, [#allocation10], %s1929_s17, %s1929_s17, %s1930_s18  }
  0x45   : > { %s1776_s20 = scalar_lea.hbm %s2526_s3, 256 }
  0x46   : > { %p1777_p6 = scmp.ne.s32.totalorder %s2526_s3, %s1776_s20  ;;  %p1783_p5 = scmp.lt.u32.totalorder %s1776_s20, %s2526_s3 }
  0x48   : > { %p1779_p10 = pnand %p1777_p6, %p2071_p13 }
  0x4a   : > { %p1780_p3 = pneg %p1779_p10 }
  0x4c   : > { %p1785_p7 = pnand %p1783_p5, %p1780_p3 }
  0x4e   : > { %1788 = shalt.err (!%p1785_p7)
}
  0x4f   : > { %s1789_s11 = scalar_lea.vmem %s268_s16, 256  ;;  %p1797_p1 = scmp.lt.s32.totalorder %s268_s16, %s268_s16 }
  0x50   : > { %p1790_p9 = scmp.ne.s32.totalorder %s268_s16, %s1789_s11  ;;  %p1798_p4 = scmp.lt.s32.totalorder %s1789_s11, %s1789_s11 }
  0x52   : > { %p1792_p12 = pnand %p1790_p9, %p2071_p13  ;;  %p1799_p8 = por %p1798_p4, %p1797_p1 }
  0x54   : > { %p1793_p0 = pneg %p1792_p12 }
  0x56   : > { %p1800_p2 = pnand %p1799_p8, %p1793_p0 }
  0x58   : > { %1803 = shalt.err (!%p1800_p2)
}
  0x59   : > { %1591 = dma.hbm_to_vmem [thread:$0]  (!%p2055_p11), %s2526_s3, 256, %s268_s16, [#allocation13], %s1929_s17, %s1929_s17, %s1930_s18  }
  0x5a   : > { %s50_s28 = sadd.s32 1, %s1912_s23  ;;  %s43_s12 = sadd.s32 1, %s1920_s25 }
  0x5b   : > { %p57_p2 = scmp.ne.s32.totalorder %s1912_s23, %s1908_s22  ;;  %p45_p8 = scmp.ge.s32.totalorder %s43_s12, 2 }
  0x5c   : > { %p58_p13 = scmp.eq.s32.totalorder %s1924_s26, 0  ;;  %p2547_p6 = scmp.ne.s32.totalorder %s2540_s30, 0 }
  0x5d   : > { %p1603_p3 = scmp.lt.s32.totalorder %s1924_s26, 2  ;;  %s2564_s12 = smov (%p45_p8, %s43_s12), 0 }
  0x5e   : > { %p2150_p10 = por %p2547_p6, %p57_p2  ;;  %p59_p5 = por %p58_p13, %p57_p2 }
  0x5f   : > { %s287_s8 = sand.u32 1, %s1912_s23   ;;  %s47_s19 = ssub.s32 %s1920_s25, %s2564_s12 }
  0x60   : > { %p48_p7 = scmp.eq.s32.totalorder %s47_s19, 0  ;;  %s1437_s16 = sshll.u32 %s287_s8, 2 }
  0x61   : > { %s1438_s17 = sshll.u32 %s1920_s25, 6  ;;  %s291_s10 = scalar_lea.vmem [#allocation6], %s1437_s16 }
  0x62   : > { %s2162_s18 = scalar_select %p48_p7, %s1912_s23, %s50_s28  }
  0x63   : > { %s2167_s30 = scalar_lea.hbm %s2523_s0, %s1438_s17  ;;  %s298_s13 = sshll.u32 %s291_s10, 4  ;;  %s2169_s13 = int_to_ptr.vmem [resolvable:$true] %s298_s13 }
  0x64   : > { %p2173_p11 = pnand %p1603_p3, %p59_p5  ;;  %s288_s11 = scalar_lea.sflag [#allocation7], %s287_s8 }
  0x65   : > { %s1804_s14 = scalar_lea.hbm %s2167_s30, 64  ;;  %s1809_s19 = scalar_lea.hbm %s2523_s0, 128 }
  0x66   : > { %p1805_p9 = scmp.ne.s32.totalorder %s2167_s30, %s1804_s14  ;;  %p1806_p12 = pneg %p2173_p11 }
  0x67   : > { %p1810_p4 = scmp.lt.u32.totalorder %s2167_s30, %s2523_s0  ;;  %p1811_p2 = scmp.lt.u32.totalorder %s1809_s19, %s1804_s14 }
  0x68   : > { %p1807_p0 = pnand %p1806_p12, %p1805_p9  ;;  %p1813_p13 = scmp.lt.u32.totalorder %s1804_s14, %s2167_s30 }
  0x69   : > { %p1812_p8 = por %p1811_p2, %p1810_p4 }
  0x6a   : > { %p1808_p1 = pneg %p1807_p0 }
  0x6b   : > { %p1814_p6 = por %p1813_p13, %p1812_p8 }
  0x6d   : > { %p1815_p3 = pnand %p1814_p6, %p1808_p1 }
  0x6f   : > { %1818 = shalt.err (!%p1815_p3)
}
  0x70   : > { %s1819_s8 = scalar_lea.vmem %s2169_s13, 64  ;;  %s1931_s20 = smov [#allocation6]  }
  0x71   : > { %p1820_p5 = scmp.ne.s32.totalorder %s2169_s13, %s1819_s8  ;;  %s1824_s27 = sshll.u32 %s1931_s20, 4  ;;  %s1825_s27 = int_to_ptr.vmem [resolvable:$false] %s1824_s27 }
  0x72   : > { %s1826_s10 = scalar_lea.vmem %s1825_s27, 128  ;;  %p1827_p0 = scmp.lt.s32.totalorder %s2169_s13, %s1825_s27 }
  0x73   : > { %p1822_p7 = pnand %p1820_p5, %p1806_p12  ;;  %p1828_p4 = scmp.lt.s32.totalorder %s1826_s10, %s1819_s8 }
  0x75   : > { %p1823_p9 = pneg %p1822_p7  ;;  %p1829_p2 = por %p1828_p4, %p1827_p0 }
  0x77   : > { %p1830_p8 = pnand %p1829_p2, %p1823_p9 }
  0x79   : > { %1833 = shalt.err (!%p1830_p8)
}
  0x7a   : > { %1595 = dma.hbm_to_vmem [thread:$0]  (!%p2173_p11), %s2167_s30, 64, %s2169_s13, %s288_s11  }
  0x7b   : > { %p2550_p1 = scmp.ne.s32.totalorder %s2544_s9, 0 }
  0x7c   : > { %s2205_s14 = sand.u32 (!%p2550_p1), 1, %s1908_s22   ;;  %p2551_p12 = scmp.ne.s32.totalorder (!%p2550_p1), %s2541_s7, 0 }
  0x7d   : > { %307 = sbr.rel (%p2550_p1) target bundleno = 1841 (0x731), region = 44  ;;  %s1440_s6 = sshll.u32 (!%p2550_p1), %s2205_s14, 2 }
  0x7e   : > { %s310_s28 = scalar_lea.sflag (!%p2550_p1), [#allocation7], %s2205_s14  ;;  %s313_s19 = scalar_lea.vmem (!%p2550_p1), [#allocation6], %s1440_s6 }
  0x84   : > { %1887 = dma.done.wait (%p2551_p12), %s310_s28, 64  }
  0x85   : > { %1889 = vsyncadd (%p2551_p12), %s310_s28, 4294967232  ;;  %p2552_p13 = scmp.ne.s32.totalorder %s2539_s29, 0 }
  0x87   : > { %1891 = dma.done.wait (%p2552_p13), [#allocation10], 512  }
  0x88   : > { %1893 = vsyncadd (%p2552_p13), [#allocation10], 4294966784 }
  0x89   : > { %1895 = dma.done.wait (%p2552_p13), [#allocation13], 256  }
  0x8a   : > { %1897 = vsyncadd (%p2552_p13), [#allocation13], 4294967040  ;;  %vm361_vm0 = vcmask 261120   ;;  %v1932_v0 = vmov 0.0   ;;  %vm1933_vm1 = vmmov 0   ;;  %v1693_v1 = vld [vmem:[#allocation9] sm:$0xff]  }
  0x8b   : > { %1494 = vmatprep.subr.bf16.mxu0 %v1932_v0  ;;  %1498 = vmatprep.mubr.msk.bf16.mxu0 %vm1933_vm1, %v1932_v0  ;;  %495 = vst.msk [vmem:[#allocation5] sm:$0xff] %vm361_vm0, %v1932_v0  ;;  %v1694_v2 = vld [vmem:[#allocation9 + $0x8] sm:$0xff]   ;;  %v1695_v3 = vld [vmem:[#allocation11] sm:$0xff]   ;;  %v1696_v4 = vld [vmem:[#allocation11 + $0x8] sm:$0xff]   ;;  %vm437_vm2 = vcmask 31744   ;;  %s1934_s29 = smov 108  }
  0x8c   : > { %1502 = vmatprep.subr.bf16.mxu1 %v1932_v0  ;;  %1506 = vmatprep.mubr.msk.bf16.mxu1 %vm1933_vm1, %v1932_v0  ;;  %v366_v5 = vld [vmem:[%s313_s19] sm:$0xf]  ;;  %494 = vst.msk [vmem:[#allocation4] sm:$0xff] %vm437_vm2, %v1932_v0  ;;  %s1935_s7 = smov 124   ;;  %s1936_s9 = smov 100   ;;  %vm484_vm3 = vcmask 64512  }
  0x8d   : > { %1495 = vmatpush3.bf16.msra.mxu0 %v1693_v1  ;;  %1503 = vmatpush3.bf16.msra.mxu1 %v1695_v3  ;;  %v501_v6 = vld [vmem:[%s313_s19] sm:$0xf]  ;;  %s1937_s30 = smov 116   ;;  %s1938_s11 = smov 8   ;;  %vm486_vm4 = vcmask 130048   ;;  %vm488_vm5 = vcmask 195584  }
  0x8e   : > { %1496 = vmatprep.subr.bf16.mxu0 %v1932_v0  ;;  %1504 = vmatprep.subr.bf16.mxu1 %v1932_v0  ;;  %v2256_v15 = vld [vmem:[%s2527_s4] sm:$0xff]  ;;  %s1939_s16 = smov 16   ;;  %s1940_s17 = smov 24   ;;  %vm491_vm6 = vcmask 257024   ;;  %vm658_vm8 = vcmask 7168   ;;  %vm815_vm9 = vcmask 15368  }
  0x8f   : > { %s1941_s8 = smov 4   ;;  %v2269_v18 = vld [vmem:[%s2528_s5] sm:$0xff]  ;;  %s1942_s10 = smov 120   ;;  %vm974_vm10 = vcmask 23568   ;;  %vm1133_vm11 = vcmask 31768   ;;  %vm674_vm12 = vcmask 1043456  }
  0x90   : > { %s1943_s6 = smov 112   ;;  %s1944_s28 = smov 104   ;;  %vm878_vm13 = vcmask 130112   ;;  %vm1037_vm14 = vcmask 195712   ;;  %vm1196_vm15 = vcmask 261312  }
  0x91   : > { %1497 = vmatpush3.bf16.msra.mxu0 %v1694_v2  ;;  %1505 = vmatpush3.bf16.msra.mxu1 %v1696_v4  ;;  %s1948_s19 = smov 96   ;;  %s1466_s15 = sshll.u32 %s1916_s24, 7 }
  0x92   : > { %1510 = vmatprep.subr.bf16.mxu0 %v1932_v0  ;;  %1516 = vmatprep.subr.bf16.mxu1 %v1932_v0  ;;  %s1295_s27 = scalar_lea.sflag [#allocation8], %s2205_s14 }
  0x94   : > { %1499 = vmatmul.mubr.msk.bf16.vlgmr.msra.gmra.mrb[0].mxu0 %vm361_vm0, %v366_v5  ;;  %1507 = vmatmul.mubr.msk.bf16.vlgmr.msra.gmra.mrb[0].mxu1 %vm361_vm0, %v501_v6 }
  0x95   : > { %1512 = vmatprep.mubr.msk.bf16.mxu0 %vm1933_vm1, %v1932_v0  ;;  %1518 = vmatprep.mubr.msk.bf16.mxu1 %vm1933_vm1, %v1932_v0 }
 0x167   : > { %v2241_v7 = vpop.f32.mrb[0].mxu0  ;;  %v2245_v11 = vpop.f32.mrb[0].mxu1 }
 0x168   : > { %460 = vrot.lane.b32.xlu1 %v2241_v7, %s1934_s29  ;;  %431 = vrot.lane.b32.xlu0 %v2241_v7, %s1935_s7  ;;  %v1500_v8 = vpop.f32.mrb[1].mxu0  ;;  %v1508_v12 = vpop.f32.mrb[1].mxu1  ;;  %v429_v41 = vmul.f32 %v2256_v15, %v2241_v7 }
 0x169   : > { %v424_v9 = vpop.f32.mrb[2].mxu0  ;;  %v559_v13 = vpop.f32.mrb[2].mxu1 }
 0x16a   : > { %v1501_v10 = vpop.f32.mrb[3].mxu0  ;;  %v1509_v14 = vpop.f32.mrb[3].mxu1 }
 0x16b   : > { %v574_v14 = vmul.f32 %v2245_v11, %v2256_v15 }
 0x16c   : > { %474 = vrot.lane.b32.xlu1 %v2241_v7, %s1936_s9  ;;  %446 = vrot.lane.b32.xlu0 %v2241_v7, %s1937_s30 }
 0x170   : > { %726 = vrot.lane.b32.xlu1 %v2245_v11, %s1937_s30  ;;  %576 = vrot.lane.b32.xlu0 %v2245_v11, %s1935_s7  ;;  %s1952_s7 = smov 80   ;;  %s1444_s30 = sshll.u32 %s2205_s14, 3 }
 0x171   : > { %s2457_s13 = scalar_lea.vmem [#allocation14], %s1444_s30 }
 0x172   : > { %362 = vst.msk [vmem:[%s2457_s13] sm:$0xff] %vm361_vm0, %v1932_v0 }
 0x174   : > { %1044 = vrot.lane.b32.xlu1 %v2245_v11, %s1936_s9  ;;  %885 = vrot.lane.b32.xlu0 %v2245_v11, %s1934_s29  ;;  %s1950_s29 = smov 88   ;;  %s1953_s9 = smov 72  }
 0x178   : > { %442 = vrot.lane.b32.xlu1 %v2256_v15, %s1938_s11  ;;  %456 = vrot.lane.b32.xlu0 %v2256_v15, %s1939_s16 }
 0x17c   : > { %470 = vrot.lane.b32.xlu0 %v2256_v15, %s1940_s17 }
 0x180   : > { %434 = vrot.lane.b32.xlu0 %v2241_v7, %s1941_s8 }
 0x1da   : > { %v461_v16 = vpop.permute.xlu1 %460  ;;  %v432_v17 = vpop.permute.xlu0 %431 }
 0x1de   : > { %v475_v19 = vpop.permute.xlu1 %474  ;;  %v447_v20 = vpop.permute.xlu0 %446 }
 0x1df   : > { %v477_v21 = vsel %vm437_vm2, %v475_v19, %v461_v16  ;;  %v449_v22 = vsel %vm437_vm2, %v447_v20, %v432_v17  ;;  %v463_v25 = vsel %vm437_vm2, %v461_v16, %v447_v20 }
 0x1e0   : > { %v478_v23 = vmul.f32 %v477_v21, %v2269_v18  ;;  %v450_v24 = vmul.f32 %v449_v22, %v2269_v18  ;;  %v464_v29 = vmul.f32 %v463_v25, %v2269_v18 }
 0x1e2   : > { %v727_v26 = vpop.permute.xlu1 %726  ;;  %480 = vrot.lane.b32.xlu0 %v478_v23, %s1940_s17  ;;  %452 = vrot.lane.b32.xlu1 %v450_v24, %s1938_s11  ;;  %v2278_v27 = vpop.permute.xlu0 %576 }
 0x1e3   : > { %v729_v28 = vsel %vm437_vm2, %v727_v26, %v2278_v27 }
 0x1e4   : > { %v730_v30 = vmul.f32 %v729_v28, %v2269_v18 }
 0x1e6   : > { %466 = vrot.lane.b32.xlu1 %v464_v29, %s1939_s16  ;;  %732 = vrot.lane.b32.xlu0 %v730_v30, %s1938_s11  ;;  %v886_v31 = vpop.permute.xlu0 %885  ;;  %v1045_v33 = vpop.permute.xlu1 %1044 }
 0x1e7   : > { %v888_v32 = vsel %vm437_vm2, %v886_v31, %v727_v26  ;;  %v1047_v35 = vsel %vm437_vm2, %v1045_v33, %v886_v31  ;;  %v566_v31 = vlaneseq }
 0x1e8   : > { %v889_v34 = vmul.f32 %v888_v32, %v2269_v18  ;;  %v1048_v37 = vmul.f32 %v1047_v35, %v2269_v18 }
 0x1e9   : > { %v567_v32 = vshrl.u32 %v566_v31, 7  ;;  %v569_v33 = vand.u32 127, %v566_v31 }
 0x1ea   : > { %722 = vrot.lane.b32.xlu1 %v2256_v15, %s1938_s11  ;;  %891 = vrot.lane.b32.xlu0 %v889_v34, %s1939_s16  ;;  %v457_v36 = vpop.permute.xlu0 %456  ;;  %v443_v44 = vpop.permute.xlu1 %442  ;;  %v1945_v34 = vmov -1e+30  }
 0x1eb   : > { %v445_v45 = vmul.f32 %v443_v44, %v2241_v7  ;;  %v459_v49 = vmul.f32 %v457_v36, %v2241_v7  ;;  %493 = vst.msk [vmem:[#allocation3] sm:$0xff] %vm437_vm2, %v1945_v34  ;;  %vm572_vm7 = vcmp.le.s32.totalorder %v569_v33, %v567_v32 }
 0x1ee   : > { %881 = vrot.lane.b32.xlu1 %v2256_v15, %s1939_s16  ;;  %1050 = vrot.lane.b32.xlu0 %v1048_v37, %s1940_s17  ;;  %v471_v38 = vpop.permute.xlu0 %470 }
 0x1ef   : > { %v473_v51 = vmul.f32 %v471_v38, %v2241_v7 }
 0x1f2   : > { %1040 = vrot.lane.b32.xlu1 %v2256_v15, %s1940_s17  ;;  %v435_v39 = vpop.permute.xlu0 %434 }
 0x1f3   : > { %v438_v40 = vsel %vm437_vm2, %v432_v17, %v435_v39 }
 0x1f4   : > { %v439_v42 = vmul.f32 %v438_v40, %v2269_v18 }
 0x1f6   : > { %v440_v43 = vadd.f32 %v439_v42, %v429_v41  ;;  %579 = vrot.lane.b32.xlu1 %v2245_v11, %s1941_s8  ;;  %v1946_v41 = vmov 0   ;;  %s2553_s8 = sld [smem:[#allocation21_spill]] }
 0x1f7   : > { %1683 = vset.pattern.permute.xlu1 %v1946_v41 }
 0x1fc   : > { %s2472_s20 = scalar_lea.hbm %s2553_s8, %s1466_s15 }
 0x254   : > { %v453_v46 = vpop.permute.xlu1 %452  ;;  %v481_v47 = vpop.permute.xlu0 %480 }
 0x255   : > { %v455_v48 = vadd.f32 %v453_v46, %v445_v45  ;;  %v483_v54 = vadd.f32 %v481_v47, %v473_v51 }
 0x257   : > { %v485_v50 = vsel %vm484_vm3, %v440_v43, %v455_v48 }
 0x258   : > { %v467_v52 = vpop.permute.xlu1 %466  ;;  %v733_v55 = vpop.permute.xlu0 %732 }
 0x259   : > { %v469_v53 = vadd.f32 %v467_v52, %v459_v49 }
 0x25b   : > { %v487_v56 = vsel %vm486_vm4, %v485_v50, %v469_v53 }
 0x25c   : > { %v489_v57 = vsel %vm488_vm5, %v487_v56, %v483_v54  ;;  %v723_v58 = vpop.permute.xlu1 %722  ;;  %v892_v62 = vpop.permute.xlu0 %891 }
 0x25d   : > { %v490_v59 = vpack.c.bf16 %v489_v57, %v489_v57  ;;  %v725_v60 = vmul.f32 %v723_v58, %v2245_v11 }
 0x25f   : > { %492 = vst.msk [vmem:[#allocation2] sm:$0xf] %vm491_vm6, %v490_v59  ;;  %v735_v61 = vadd.f32 %v733_v55, %v725_v60  ;;  %v1947_v60 = vmov 1  }
 0x260   : > { %v882_v63 = vpop.permute.xlu1 %881  ;;  %v1051_v7 = vpop.permute.xlu0 %1050  ;;  %1684 = vset.pattern.permute.xlu0 %v1947_v60 }
 0x261   : > { %v736_v1 = vpack.c.bf16 %v735_v61, %v735_v61  ;;  %v884_v2 = vmul.f32 %v882_v63, %v2245_v11  ;;  %v2360_v61 = vld [vmem:[#allocation3] sm:$0xff] }
 0x263   : > { %v894_v3 = vadd.f32 %v892_v62, %v884_v2  ;;  %744 = vrot.lane.b32.xlu0 %v736_v1, %s1942_s10  ;;  %v573_v2 = vpack.c.bf16 %v2245_v11, %v2245_v11 }
 0x264   : > { %v1041_v4 = vpop.permute.xlu1 %1040 }
 0x265   : > { %v895_v5 = vpack.c.bf16 %v894_v3, %v894_v3  ;;  %v1043_v6 = vmul.f32 %v1041_v4, %v2245_v11  ;;  %v1949_v3 = vmov 2  }
 0x266   : > { %v1697_v8 = vld [vmem:[#allocation2] ss:$0 sps:$4 sm:$0xff]  }
 0x267   : > { %v1053_v9 = vadd.f32 %v1051_v7, %v1043_v6  ;;  %903 = vrot.lane.b32.xlu0 %v895_v5, %s1943_s6  ;;  %741 = vrot.lane.b32.xlu1 %v1697_v8, %s1942_s10  ;;  %v1698_v17 = vld [vmem:[#allocation2] ss:$0 sps:$4 sm:$0xff]   ;;  %s1954_s10 = smov [#allocation14]  }
 0x268   : > { %v580_v10 = vpop.permute.xlu1 %579  ;;  %v1699_v21 = vld [vmem:[#allocation2] ss:$0 sps:$4 sm:$0xff]  }
 0x269   : > { %v1054_v12 = vpack.c.bf16 %v1053_v9, %v1053_v9  ;;  %v583_v13 = vsel %vm437_vm2, %v2278_v27, %v580_v10  ;;  %v587_v23 = vld [vmem:[#allocation2] sm:$0xf] }
 0x26a   : > { %v584_v16 = vmul.f32 %v583_v13, %v2269_v18 }
 0x26b   : > { %1062 = vrot.lane.b32.xlu0 %v1054_v12, %s1944_s28  ;;  %900 = vrot.lane.b32.xlu1 %v1698_v17, %s1943_s6  ;;  %v1951_v12 = vmov 3   ;;  %s1838_s6 = sshll.u32 %s1954_s10, 4  ;;  %s1839_s6 = int_to_ptr.vmem [resolvable:$false] %s1838_s6 }
 0x26c   : > { %v585_v19 = vadd.f32 %v584_v16, %v574_v14 }
 0x26e   : > { %v586_v20 = vpack.c.bf16 %v585_v19, %v585_v19 }
 0x26f   : > { %1059 = vrot.lane.b32.xlu1 %v1699_v21, %s1944_s28  ;;  %s1840_s28 = scalar_lea.vmem %s1839_s6, 256 }
 0x270   : > { %v593_v22 = vsel %vm484_vm3, %v586_v20, 0 }
 0x271   : > { %1511 = vmatpush3.bf16.xpose.msra.mxu0 %v593_v22 }
 0x272   : > { %1522 = vmatprep.subr.bf16.mxu0 %v1932_v0 }
 0x278   : > { %1513 = vmatmul.mubr.msk.bf16.vlgmr.msra.gmra.mrb[4].mxu0 %vm484_vm3, %v587_v23 }
 0x279   : > { %1524 = vmatprep.mubr.msk.bf16.mxu0 %vm1933_vm1, %v1932_v0 }
 0x2d5   : > { %v745_v15 = vpop.permute.xlu0 %744 }
 0x2d6   : > { %v750_v18 = vsel %vm484_vm3, %v745_v15, 0 }
 0x2d7   : > { %1523 = vmatpush3.bf16.xpose.msra.mxu0 %v750_v18 }
 0x2d8   : > { %1534 = vmatprep.subr.bf16.mxu0 %v1932_v0 }
 0x2d9   : > { %v904_v24 = vpop.permute.xlu0 %903  ;;  %v742_v25 = vpop.permute.xlu1 %741 }
 0x2da   : > { %v909_v26 = vsel %vm484_vm3, %v904_v24, 0 }
 0x2dd   : > { %v1063_v27 = vpop.permute.xlu0 %1062  ;;  %v901_v28 = vpop.permute.xlu1 %900 }
 0x2de   : > { %1525 = vmatmul.mubr.msk.bf16.vlgmr.msra.gmra.mrb[8].mxu0 %vm484_vm3, %v742_v25  ;;  %v1068_v29 = vsel %vm484_vm3, %v1063_v27, 0 }
 0x2df   : > { %1535 = vmatpush3.bf16.xpose.msra.mxu0 %v909_v26  ;;  %1536 = vmatprep.mubr.msk.bf16.mxu0 %vm1933_vm1, %v1932_v0 }
 0x2e0   : > { %1546 = vmatprep.subr.bf16.mxu0 %v1932_v0 }
 0x2e1   : > { %v1060_v30 = vpop.permute.xlu1 %1059 }
 0x2e6   : > { %1537 = vmatmul.mubr.msk.bf16.vlgmr.msra.gmra.mrb[12].mxu0 %vm484_vm3, %v901_v28 }
 0x2e7   : > { %1547 = vmatpush3.bf16.xpose.msra.mxu0 %v1068_v29  ;;  %1548 = vmatprep.mubr.msk.bf16.mxu0 %vm1933_vm1, %v1932_v0 }
 0x2e8   : > { %1558 = vmatprep.subr.bf16.mxu0 %v1932_v0 }
 0x2ee   : > { %1549 = vmatmul.mubr.msk.bf16.vlgmr.msra.gmra.mrb[16].mxu0 %vm484_vm3, %v1060_v30 }
 0x2ef   : > { %1562 = vmatprep.mubr.msk.bf16.mxu0 %vm1933_vm1, %v1932_v0 }
 0x34b   : > { %v629_v35 = vpop.f32.mrb[4].mxu0 }
 0x34c   : > { %v2340_v36 = vsel %vm572_vm7, %v629_v35, -1e+30  ;;  %v1514_v37 = vpop.f32.mrb[5].mxu0 }
 0x34d   : > { %v632_v38 = vpop.f32.mrb[6].mxu0  ;;  %v637_v39 = vsel %vm484_vm3, %v2340_v36, -inf }
 0x34e   : > { %638 = vmax.xlane.f32.xlu0 %v637_v39  ;;  %v1515_v40 = vpop.f32.mrb[7].mxu0 }
 0x3b1   : > { %v786_v42 = vpop.f32.mrb[8].mxu0 }
 0x3b2   : > { %v2346_v43 = vsel %vm572_vm7, %v786_v42, -1e+30  ;;  %v1526_v44 = vpop.f32.mrb[9].mxu0 }
 0x3b3   : > { %v789_v45 = vpop.f32.mrb[10].mxu0  ;;  %v794_v46 = vsel %vm484_vm3, %v2346_v43, -inf }
 0x3b4   : > { %795 = vmax.xlane.f32.xlu1 %v794_v46  ;;  %v1527_v47 = vpop.f32.mrb[11].mxu0 }
 0x3b9   : > { %v945_v48 = vpop.f32.mrb[12].mxu0 }
 0x3ba   : > { %v2351_v49 = vsel %vm572_vm7, %v945_v48, -1e+30  ;;  %v1538_v50 = vpop.f32.mrb[13].mxu0 }
 0x3bb   : > { %v948_v51 = vpop.f32.mrb[14].mxu0  ;;  %v953_v52 = vsel %vm484_vm3, %v2351_v49, -inf }
 0x3bc   : > { %954 = vmax.xlane.f32.xlu0 %v953_v52  ;;  %v1539_v53 = vpop.f32.mrb[15].mxu0 }
 0x3c1   : > { %v1104_v54 = vpop.f32.mrb[16].mxu0 }
 0x3c2   : > { %v2356_v55 = vsel %vm572_vm7, %v1104_v54, -1e+30  ;;  %v1550_v56 = vpop.f32.mrb[17].mxu0  ;;  %v652_v54 = vld [vmem:[#allocation4] sm:$0xff] }
 0x3c3   : > { %v1107_v57 = vpop.f32.mrb[18].mxu0  ;;  %v1112_v58 = vsel %vm484_vm3, %v2356_v55, -inf }
 0x3c4   : > { %1113 = vmax.xlane.f32.xlu0 %v1112_v58  ;;  %v1551_v59 = vpop.f32.mrb[19].mxu0 }
 0x3db   : > { %v639_v62 = vpop.xlane.xlu0 %638 }
 0x3dc   : > { %v2363_v63 = vmax.f32 %v2360_v61, %v639_v62 }
 0x3de   : > { %v641_v1 = vsub.f32 %v2360_v61, %v2363_v63  ;;  %720 = vst.msk [vmem:[#allocation3] sm:$0xff] %vm658_vm8, %v2363_v63  ;;  %646 = vperm.xlu1 %1683, %v2363_v63  }
 0x3e0   : > { %v642_v46 = vmul.f32 1.442695, %v641_v1 }
 0x3e2   : > { %669 = vrot.lane.b32.xlu1 %v573_v2, %s1948_s19 }
 0x3e3   : > { %1685 = vset.pattern.permute.xlu1 %v1949_v3 }
 0x3e5   : > { %v2373_v4 = vld [vmem:[#allocation3] sm:$0xff] }
 0x441   : > { %v796_v5 = vpop.xlane.xlu1 %795 }
 0x442   : > { %v2376_v6 = vmax.f32 %v2373_v4, %v796_v5 }
 0x444   : > { %v798_v7 = vsub.f32 %v2373_v4, %v2376_v6  ;;  %880 = vst.msk [vmem:[#allocation3] sm:$0xff] %vm815_vm9, %v2376_v6  ;;  %803 = vperm.xlu0 %1684, %v2376_v6  }
 0x446   : > { %v799_v52 = vmul.f32 1.442695, %v798_v7 }
 0x449   : > { %v955_v8 = vpop.xlane.xlu0 %954 }
 0x44b   : > { %v2383_v11 = vld [vmem:[#allocation3] sm:$0xff] }
 0x44c   : > { %v2386_v9 = vmax.f32 %v2383_v11, %v955_v8 }
 0x44e   : > { %v957_v10 = vsub.f32 %v2383_v11, %v2386_v9  ;;  %1039 = vst.msk [vmem:[#allocation3] sm:$0xff] %vm974_vm10, %v2386_v9  ;;  %962 = vperm.xlu1 %1685, %v2386_v9  }
 0x450   : > { %v958_v62 = vmul.f32 1.442695, %v957_v10 }
 0x451   : > { %v1114_v14 = vpop.xlane.xlu0 %1113 }
 0x452   : > { %825 = vrot.lane.b32.xlu1 %v573_v2, %s1950_s29 }
 0x453   : > { %1686 = vset.pattern.permute.xlu1 %v1951_v12 }
 0x455   : > { %v2394_v13 = vld [vmem:[#allocation3] sm:$0xff] }
 0x456   : > { %v2397_v16 = vmax.f32 %v2394_v13, %v1114_v14 }
 0x458   : > { %v1116_v17 = vsub.f32 %v2394_v13, %v2397_v16  ;;  %1198 = vst.msk [vmem:[#allocation3] sm:$0xff] %vm1133_vm11, %v2397_v16  ;;  %1121 = vperm.xlu1 %1686, %v2397_v16  }
 0x45a   : > { %v1117_v5 = vmul.f32 1.442695, %v1116_v17 }
 0x45c   : > { %984 = vrot.lane.b32.xlu1 %v573_v2, %s1952_s7 }
 0x45d   : > { %v647_v19 = vpop.permute.xlu1 %646  ;;  %1687 = vset.pattern.permute.xlu1 %v1946_v41 }
 0x45e   : > { %v649_v20 = vsub.f32 %v2340_v36, %v647_v19  ;;  %v660_v19 = vld [vmem:[#allocation5] sm:$0xff] }
 0x460   : > { %v650_v21 = vmul.f32 1.442695, %v649_v20  ;;  %1143 = vrot.lane.b32.xlu1 %v573_v2, %s1953_s9 }
 0x461   : > { %v670_v22 = vpop.permute.xlu1 %669 }
 0x462   : > { %1702 = vpow2.f32 %v650_v21  ;;  %v676_v23 = vsel %vm674_vm12, %v670_v22, 0 }
 0x463   : > { %1517 = vmatpush3.bf16.msra.mxu1 %v676_v23 }
 0x464   : > { %1528 = vmatprep.subr.bf16.mxu1 %v1932_v0 }
 0x46c   : > { %v1703_v15 = vpop.eup %1702 }
 0x46d   : > { %v667_v18 = vpack.c.bf16 %v1703_v15, %v1703_v15  ;;  %v654_v24 = vsel %vm484_vm3, %v1703_v15, 0.0 }
 0x46f   : > { %1519 = vmatmul.mubr.msk.bf16.vlgmr.msra.gmra.mrb[4].mxu1 %vm484_vm3, %v667_v18 }
 0x470   : > { %1530 = vmatprep.mubr.msk.bf16.mxu1 %vm1933_vm1, %v1932_v0 }
 0x484   : > { %655 = vadd.xlane.f32.xlu1 %v654_v24 }
 0x4c3   : > { %v804_v25 = vpop.permute.xlu0 %803 }
 0x4c4   : > { %v806_v26 = vsub.f32 %v2346_v43, %v804_v25 }
 0x4c6   : > { %v807_v27 = vmul.f32 1.442695, %v806_v26 }
 0x4c8   : > { %1704 = vpow2.f32 %v807_v27 }
 0x4cd   : > { %v963_v28 = vpop.permute.xlu1 %962 }
 0x4ce   : > { %v965_v29 = vsub.f32 %v2351_v49, %v963_v28 }
 0x4d0   : > { %v966_v30 = vmul.f32 1.442695, %v965_v29 }
 0x4d1   : > { %v826_v31 = vpop.permute.xlu1 %825 }
 0x4d2   : > { %v1705_v32 = vpop.eup %1704  ;;  %1706 = vpow2.f32 %v966_v30  ;;  %v831_v33 = vsel %vm674_vm12, %v826_v31, 0 }
 0x4d3   : > { %1529 = vmatpush3.bf16.msra.mxu1 %v831_v33  ;;  %v811_v34 = vsel %vm484_vm3, %v1705_v32, 0.0  ;;  %v824_v35 = vpack.c.bf16 %v1705_v32, %v1705_v32 }
 0x4d4   : > { %812 = vadd.xlane.f32.xlu0 %v811_v34  ;;  %1540 = vmatprep.subr.bf16.mxu1 %v1932_v0 }
 0x4d6   : > { %1531 = vmatmul.mubr.msk.bf16.vlgmr.msra.gmra.mrb[8].mxu1 %vm484_vm3, %v824_v35  ;;  %v1700_v35 = vld [vmem:[#allocation12] sm:$0xff]  }
 0x4d7   : > { %v1122_v36 = vpop.permute.xlu1 %1121  ;;  %1542 = vmatprep.mubr.msk.bf16.mxu1 %vm1933_vm1, %v1932_v0  ;;  %1559 = vmatpush3.bf16.msra.mxu0 %v1700_v35 }
 0x4d8   : > { %v1124_v37 = vsub.f32 %v2356_v55, %v1122_v36  ;;  %1560 = vmatprep.subr.bf16.mxu0 %v1932_v0 }
 0x4da   : > { %v1125_v38 = vmul.f32 1.442695, %v1124_v37 }
 0x4db   : > { %v985_v39 = vpop.permute.xlu1 %984 }
 0x4dc   : > { %v1707_v40 = vpop.eup %1706  ;;  %1708 = vpow2.f32 %v1125_v38  ;;  %v990_v42 = vsel %vm674_vm12, %v985_v39, 0 }
 0x4dd   : > { %1541 = vmatpush3.bf16.msra.mxu1 %v990_v42  ;;  %v970_v43 = vsel %vm484_vm3, %v1707_v40, 0.0  ;;  %v983_v44 = vpack.c.bf16 %v1707_v40, %v1707_v40  ;;  %1710 = vpow2.f32 %v642_v46 }
 0x4de   : > { %971 = vadd.xlane.f32.xlu1 %v970_v43  ;;  %1552 = vmatprep.subr.bf16.mxu1 %v1932_v0  ;;  %1712 = vpow2.f32 %v799_v52 }
 0x4df   : > { %v1144_v45 = vpop.permute.xlu1 %1143  ;;  %1714 = vpow2.f32 %v958_v62  ;;  %v1232_v62 = vld [vmem:[%s2457_s13] sm:$0xff] }
 0x4e0   : > { %v1149_v47 = vsel %vm674_vm12, %v1144_v45, 0  ;;  %1543 = vmatmul.mubr.msk.bf16.vlgmr.msra.gmra.mrb[12].mxu1 %vm484_vm3, %v983_v44  ;;  %1716 = vpow2.f32 %v1117_v5 }
 0x4e1   : > { %1553 = vmatpush3.bf16.msra.mxu1 %v1149_v47  ;;  %1554 = vmatprep.mubr.msk.bf16.mxu1 %vm1933_vm1, %v1932_v0 }
 0x4e6   : > { %v1709_v48 = vpop.eup %1708 }
 0x4e7   : > { %v1129_v49 = vsel %vm484_vm3, %v1709_v48, 0.0  ;;  %v1142_v50 = vpack.c.bf16 %v1709_v48, %v1709_v48  ;;  %v1711_v51 = vpop.eup %1710 }
 0x4e8   : > { %1130 = vadd.xlane.f32.xlu0 %v1129_v49  ;;  %v1713_v53 = vpop.eup %1712  ;;  %v653_v55 = vmul.f32 %v1711_v51, %v652_v54 }
 0x4e9   : > { %1555 = vmatmul.mubr.msk.bf16.vlgmr.msra.gmra.mrb[16].mxu1 %vm484_vm3, %v1142_v50  ;;  %v1715_v6 = vpop.eup %1714 }
 0x4ea   : > { %v1717_v21 = vpop.eup %1716 }
 0x4ef   : > { %663 = vperm.xlu1 %1687, %v1711_v51  }
 0x4f3   : > { %1688 = vset.pattern.permute.xlu1 %v1949_v3 }
 0x4fe   : > { %820 = vperm.xlu0 %1684, %v1713_v53  }
 0x511   : > { %v656_v56 = vpop.xlane.xlu1 %655 }
 0x512   : > { %v657_v57 = vadd.f32 %v656_v56, %v653_v55 }
 0x514   : > { %659 = vst.msk [vmem:[#allocation4] sm:$0xff] %vm658_vm8, %v657_v57 }
 0x51b   : > { %v809_v63 = vld [vmem:[#allocation4] sm:$0xff] }
 0x51c   : > { %v810_v1 = vmul.f32 %v1713_v53, %v809_v63 }
 0x542   : > { %v712_v58 = vpop.f32.mrb[4].mxu1 }
 0x543   : > { %v1520_v59 = vpop.f32.mrb[5].mxu1 }
 0x544   : > { %v715_v60 = vpop.f32.mrb[6].mxu1 }
 0x545   : > { %v1521_v61 = vpop.f32.mrb[7].mxu1 }
 0x561   : > { %v813_v2 = vpop.xlane.xlu0 %812 }
 0x562   : > { %v814_v4 = vadd.f32 %v813_v2, %v810_v1 }
 0x564   : > { %816 = vst.msk [vmem:[#allocation4] sm:$0xff] %vm815_vm9, %v814_v4 }
 0x56b   : > { %v972_v7 = vpop.xlane.xlu1 %971  ;;  %v968_v8 = vld [vmem:[#allocation4] sm:$0xff] }
 0x56c   : > { %v969_v14 = vmul.f32 %v1715_v6, %v968_v8 }
 0x56e   : > { %v973_v20 = vadd.f32 %v972_v7, %v969_v14 }
 0x56f   : > { %v664_v11 = vpop.permute.xlu1 %663 }
 0x570   : > { %975 = vst.msk [vmem:[#allocation4] sm:$0xff] %vm974_vm10, %v973_v20  ;;  %v666_v9 = vmul.f32 %v664_v11, %v660_v19 }
 0x572   : > { %v718_v10 = vadd.f32 %v712_v58, %v666_v9 }
 0x574   : > { %719 = vst.msk [vmem:[#allocation5] sm:$0xff] %vm484_vm3, %v718_v10 }
 0x575   : > { %v1131_v15 = vpop.xlane.xlu0 %1130 }
 0x577   : > { %v1127_v22 = vld [vmem:[#allocation4] sm:$0xff] }
 0x578   : > { %v1128_v23 = vmul.f32 %v1717_v21, %v1127_v22 }
 0x57a   : > { %v1132_v13 = vadd.f32 %v1131_v15, %v1128_v23 }
 0x57b   : > { %v817_v36 = vld [vmem:[#allocation5] sm:$0xff] }
 0x57c   : > { %1134 = vst.msk [vmem:[#allocation4] sm:$0xff] %vm1133_vm11, %v1132_v13 }
 0x583   : > { %v1202_v17 = vld [vmem:[#allocation4] sm:$0xff] }
 0x584   : > { %1718 = vrcp.f32 %v1202_v17 }
 0x58e   : > { %v1719_v30 = vpop.eup %1718 }
 0x5a9   : > { %v867_v16 = vpop.f32.mrb[8].mxu1 }
 0x5aa   : > { %874 = vrot.lane.b32.xlu1 %v867_v16, %s1938_s11  ;;  %v1532_v18 = vpop.f32.mrb[9].mxu1  ;;  %s1308_s11 = sshll.u32 %s2457_s13, 4  ;;  %s2474_s11 = int_to_ptr.vmem [resolvable:$true] %s1308_s11 }
 0x5ab   : > { %v870_v24 = vpop.f32.mrb[10].mxu1  ;;  %s1834_s24 = scalar_lea.vmem %s2474_s11, 128  ;;  %p1841_p5 = scmp.lt.s32.totalorder %s2474_s11, %s1839_s6 }
 0x5ac   : > { %v1533_v25 = vpop.f32.mrb[11].mxu1  ;;  %p1835_p11 = scmp.ne.s32.totalorder %s2474_s11, %s1834_s24  ;;  %p1842_p7 = scmp.lt.s32.totalorder %s1840_s28, %s1834_s24 }
 0x5ae   : > { %979 = vperm.xlu1 %1688, %v1715_v6   ;;  %p1836_p6 = pnand %p1835_p11, %p2150_p10  ;;  %p1843_p9 = por %p1842_p7, %p1841_p5 }
 0x5b0   : > { %p1837_p3 = pneg %p1836_p6 }
 0x5b2   : > { %1689 = vset.pattern.permute.xlu1 %v1951_v12  ;;  %p1844_p0 = pnand %p1843_p9, %p1837_p3 }
 0x5b3   : > { %1138 = vperm.xlu1 %1689, %v1717_v21   ;;  %v1026_v26 = vpop.f32.mrb[12].mxu1 }
 0x5b4   : > { %v1544_v27 = vpop.f32.mrb[13].mxu1  ;;  %1033 = vrot.lane.b32.xlu0 %v1026_v26, %s1939_s16 }
 0x5b5   : > { %v1029_v28 = vpop.f32.mrb[14].mxu1 }
 0x5b6   : > { %v1545_v29 = vpop.f32.mrb[15].mxu1 }
 0x5b7   : > { %1690 = vset.pattern.permute.xlu1 %v1946_v41  ;;  %v1701_v41 = vld [vmem:[#allocation12 + $0x8] sm:$0xff]  }
 0x5b8   : > { %1207 = vperm.xlu1 %1690, %v1719_v30   ;;  %1561 = vmatpush3.bf16.msra.mxu0 %v1701_v41 }
 0x5bc   : > { %v1185_v31 = vpop.f32.mrb[16].mxu1  ;;  %1691 = vset.pattern.permute.xlu1 %v1949_v3  ;;  %v821_v3 = vpop.permute.xlu0 %820 }
 0x5bd   : > { %v1556_v32 = vpop.f32.mrb[17].mxu1  ;;  %1192 = vrot.lane.b32.xlu0 %v1185_v31, %s1940_s17  ;;  %1217 = vperm.xlu1 %1691, %v1719_v30   ;;  %v823_v37 = vmul.f32 %v821_v3, %v817_v36 }
 0x5be   : > { %v1188_v33 = vpop.f32.mrb[18].mxu1 }
 0x5bf   : > { %v1557_v34 = vpop.f32.mrb[19].mxu1 }
 0x5c1   : > { %1212 = vperm.xlu0 %1684, %v1719_v30  }
 0x5c5   : > { %1692 = vset.pattern.permute.xlu0 %v1951_v12 }
 0x5c6   : > { %1222 = vperm.xlu0 %1692, %v1719_v30  }
 0x61c   : > { %v875_v38 = vpop.permute.xlu1 %874 }
 0x61d   : > { %v877_v12 = vadd.f32 %v875_v38, %v823_v37 }
 0x61f   : > { %879 = vst.msk [vmem:[#allocation5] sm:$0xff] %vm878_vm13, %v877_v12 }
 0x626   : > { %v976_v40 = vld [vmem:[#allocation5] sm:$0xff]  ;;  %v1034_v43 = vpop.permute.xlu0 %1033 }
 0x62d   : > { %v980_v39 = vpop.permute.xlu1 %979 }
 0x62e   : > { %v982_v42 = vmul.f32 %v980_v39, %v976_v40 }
 0x62f   : > { %v1193_v48 = vpop.permute.xlu0 %1192 }
 0x630   : > { %v1036_v44 = vadd.f32 %v1034_v43, %v982_v42 }
 0x632   : > { %1038 = vst.msk [vmem:[#allocation5] sm:$0xff] %vm1037_vm14, %v1036_v44  ;;  %v1139_v45 = vpop.permute.xlu1 %1138 }
 0x637   : > { %v1208_v49 = vpop.permute.xlu1 %1207 }
 0x639   : > { %v1135_v46 = vld [vmem:[#allocation5] sm:$0xff] }
 0x63a   : > { %v1141_v47 = vmul.f32 %v1139_v45, %v1135_v46 }
 0x63c   : > { %v1195_v0 = vadd.f32 %v1193_v48, %v1141_v47  ;;  %v1218_v52 = vpop.permute.xlu1 %1217 }
 0x63e   : > { %1197 = vst.msk [vmem:[#allocation5] sm:$0xff] %vm1196_vm15, %v1195_v0 }
 0x640   : > { %v1213_v50 = vpop.permute.xlu0 %1212 }
 0x645   : > { %v1204_v51 = vld [vmem:[#allocation5] sm:$0xff]  ;;  %v1223_v53 = vpop.permute.xlu0 %1222 }
 0x646   : > { %v1210_v54 = vmul.f32 %v1208_v49, %v1204_v51  ;;  %v1220_v55 = vmul.f32 %v1218_v52, %v1204_v51  ;;  %v1215_v56 = vmul.f32 %v1213_v50, %v1204_v51  ;;  %v1225_v58 = vmul.f32 %v1223_v53, %v1204_v51 }
 0x648   : > { %v1226_v57 = vsel %vm484_vm3, %v1210_v54, %v1215_v56 }
 0x649   : > { %v1228_v59 = vsel %vm486_vm4, %v1226_v57, %v1220_v55 }
 0x64a   : > { %v1230_v60 = vsel %vm488_vm5, %v1228_v59, %v1225_v58 }
 0x64b   : > { %v1231_v61 = vpack.c.bf16 %v1230_v60, %v1230_v60 }
 0x64d   : > { %1563 = vmatmul.mubr.msk.bf16.vlgmr.msra.gmra.mrb[20].mxu0 %vm361_vm0, %v1231_v61 }
 0x720   : > { %v1286_v63 = vpop.f32.mrb[20].mxu0 }
 0x721   : > { %v1292_v1 = vadd.f32 %v1286_v63, %v1232_v62  ;;  %v1564_v2 = vpop.f32.mrb[21].mxu0 }
 0x722   : > { %v1289_v4 = vpop.f32.mrb[22].mxu0 }
 0x723   : > { %1293 = vst.msk [vmem:[%s2457_s13] sm:$0xff] %vm361_vm0, %v1292_v1  ;;  %v1565_v5 = vpop.f32.mrb[23].mxu0 }
 0x724   : > { %1847 = shalt.err (!%p1844_p0)
}
 0x725   : > { %s1848_s14 = scalar_lea.hbm %s2472_s20, 128  ;;  %s1852_s7 = scalar_lea.hbm %s2553_s8, 256 }
 0x726   : > { %p1849_p4 = scmp.ne.s32.totalorder %s2472_s20, %s1848_s14  ;;  %p1853_p1 = scmp.lt.u32.totalorder %s2472_s20, %s2553_s8 }
 0x727   : > { %p1854_p12 = scmp.lt.u32.totalorder %s1852_s7, %s1848_s14  ;;  %p1856_p11 = scmp.lt.u32.totalorder %s1848_s14, %s2472_s20 }
 0x728   : > { %p1850_p2 = pnand %p1849_p4, %p2150_p10 }
 0x729   : > { %p1855_p13 = por %p1854_p12, %p1853_p1 }
 0x72a   : > { %p1851_p8 = pneg %p1850_p2 }
 0x72b   : > { %p1857_p6 = por %p1856_p11, %p1855_p13 }
 0x72d   : > { %p1858_p3 = pnand %p1857_p6, %p1851_p8 }
 0x72f   : > { %1861 = shalt.err (!%p1858_p3)
}
 0x730   : > { %1580 = dma.vmem_to_hbm [thread:$0]  (%p2150_p10), %s2474_s11, 128, %s2472_s20, %s1295_s27  }
 0x731 PF: > { %s2554_s13 = sld [smem:[#allocation19_spill]]  ;;  %s2555_s15 = sld [smem:[#allocation20_spill]] }
 0x732   : > { %p2557_p7 = scmp.ge.s32.totalorder %s1924_s26, 2 }
 0x737   : > { %s1320_s16 = sand.u32 1, %s2554_s13   ;;  %p2556_p5 = scmp.ne.s32.totalorder %s2555_s15, 0 }
 0x738   : > { %s1321_s17 = scalar_lea.sflag [#allocation8], %s1320_s16 }
 0x739   : > { %p1597_p9 = pnand %p2557_p7, %p2556_p5 }
 0x73b   : > { %1899 = dma.done.wait (!%p1597_p9), %s1321_s17, 128  }
 0x73c   : > { %1901 = vsyncadd (!%p1597_p9), %s1321_s17, 4294967168  ;;  %s24_s26 = sadd.s32 1, %s1924_s26   ;;  %s2558_s21 = smov %s1908_s22 }
 0x73d   : > { %p21_p0 = scmp.ge.s32.totalorder %s24_s26, 4   ;;  %s2559_s22 = smov %s1912_s23 }
 0x73e   : > { %s2560_s23 = smov %s2162_s18  ;;  %s2561_s24 = smov %s1920_s25 }
 0x73f   : > { %s2562_s25 = smov %s2564_s12  ;;  %23 = sbr.rel (!%p21_p0) target bundleno = 10 (0xa), region = 119 }
 0x746   :  { %1326 = vsyncpa [#allocation7], 1 }
 0x747   :  { %1328 = vsyncpa [#allocation7 + $0x1], 1 }
 0x748   :  { %1329 = vsyncpa [#allocation10], 1 }
 0x749   :  { %1330 = vsyncpa [#allocation13], 1 }
 0x74a   :  { %1331 = vsyncpa [#allocation8], 1 }
 0x74b   :  { %1333 = vsyncpa [#allocation8 + $0x1], 1 }

</bundles_post_ra>
